<compile_context>
chip_gen: v6e
topology: v6e:2x2x1
jax: 0.10.0
libtpu: 0.0.40
codegen_flags: <defaults>
</compile_context>

<pallas_src>
import functools

import jax
import jax.numpy as jnp
from jax.experimental import pallas as pl
from jax.experimental.pallas import tpu as pltpu


def _attention_kernel(x_ref, w1_ref, b1_ref, w2_ref, b2_ref, o_ref):
    # x_ref: (bb, N, A1) -- bb independent capsule sets, compact (no lane pad).
    bb, n, a1 = x_ref.shape
    x3d = x_ref[...]
    # N == 8 matches the sublane count, so merging (bb, 8) into the sublane
    # axis is a free relayout (no tile-boundary crossing).
    x2d = x3d.reshape(bb * n, a1)

    # Layer 1: Linear(A1->A2) + bias (VPU broadcast add) + ReLU.
    h = jnp.maximum(
        jnp.dot(x2d, w1_ref[...], preferred_element_type=jnp.float32)
        + b1_ref[...],
        0.0,
    )  # (bb*N, A2)

    # Layer 2: Linear(A2->A1) + bias.
    s = jnp.dot(h, w2_ref[...], preferred_element_type=jnp.float32) + b2_ref[...]
    s = s.reshape(bb, n, a1)

    # softmax over dim=0 of each capsule set (rows within a set), per column.
    # Only the A1 valid lanes are touched -- no padded-lane exp/reduce work.
    m = jnp.max(s, axis=1, keepdims=True)
    e = jnp.exp(s - m)
    denom = jnp.sum(e, axis=1, keepdims=True)
    # Exact reciprocal: approx=True would be EUP-free but risks 1e-5 tolerance.
    attn = e * pl.reciprocal(denom, approx=False)

    # condensed_x = x_in * attention_score (compact store, same block as x).
    o_ref[...] = x3d * attn


def init_attention_params(w1, b1, w2, b2):
    """One-time prep (hoisted out of the forward path).

    PyTorch layout in:  w1 (A2, A1), b1 (A2,), w2 (A1, A2), b2 (A1,)
    Returns compact, pre-transposed MXU operands and 2-D bias rows:
      W1t (A1, A2), b1r (1, A2), W2t (A2, A1), b2r (1, A1)
    """
    A2, A1 = w1.shape
    W1t = jnp.asarray(w1, jnp.float32).T            # (A1, A2)
    W2t = jnp.asarray(w2, jnp.float32).T            # (A2, A1)
    b1r = jnp.asarray(b1, jnp.float32).reshape(1, A2)
    b2r = jnp.asarray(b2, jnp.float32).reshape(1, A1)
    return W1t, b1r, W2t, b2r


@functools.partial(jax.jit, static_argnames=("block_b",))
def attention_forward(x, W1t, b1r, W2t, b2r, *, block_b=256):
    """x: (N, A1) single capsule set, or (B, N, A1) batch of independent sets.

    Softmax is over the N (row) axis of each set, matching torch's dim=0.
    block_b bounds per-step VMEM (~4*block_b KiB double-buffered I/O); 256 fits
    v5e's 16 MiB scoped default with large margin, and the grid is kept at
    >=2 steps so v7x's two TensorCores both get work.
    """
    squeeze = x.ndim == 2
    if squeeze:
        x = x[None]
    B, N, A1 = x.shape
    A2 = W1t.shape[1]
    x = jnp.asarray(x, jnp.float32)

    # >=2 grid steps whenever B >= 2 (megacore), capped at block_b (VMEM).
    bb = max(1, min(block_b, -(-B // 2))) if B > 1 else 1
    Bp = -(-B // bb) * bb
    if Bp != B:
        # Padded sets are all-zero -> finite softmax, zero output, sliced away.
        x = jnp.concatenate([x, jnp.zeros((Bp - B, N, A1), jnp.float32)], axis=0)

    out = pl.pallas_call(
        _attention_kernel,
        out_shape=jax.ShapeDtypeStruct((Bp, N, A1), jnp.float32),
        grid=(Bp // bb,),
        in_specs=[
            pl.BlockSpec((bb, N, A1), lambda b: (b, 0, 0)),  # x tile per step
            pl.BlockSpec((A1, A2), lambda b: (0, 0)),        # W1t: resident
            pl.BlockSpec((1, A2), lambda b: (0, 0)),         # b1:  resident
            pl.BlockSpec((A2, A1), lambda b: (0, 0)),        # W2t: resident
            pl.BlockSpec((1, A1), lambda b: (0, 0)),         # b2:  resident
        ],
        out_specs=pl.BlockSpec((bb, N, A1), lambda b: (b, 0, 0)),
        compiler_params=pltpu.CompilerParams(
            dimension_semantics=("parallel",),  # v7x: both TCs share the batch grid
        ),
    )(x, W1t, b1r, W2t, b2r)

    out = out[:B]
    if squeeze:
        out = out[0]
    return out


def _reference(x, w1, b1, w2, b2):
    h = jnp.maximum(x @ w1.T + b1, 0.0)
    s = h @ w2.T + b2
    a = jax.nn.softmax(s, axis=-2)  # per-set softmax over rows (torch dim=0)
    return x * a


if __name__ == "__main__":
    # Module-consistent sizes: attention_size_1=32, attention_size_2=16,
    # N=8 capsule rows per set; B=64 independent sets batched into one call.
    N, A1, A2 = 8, 32, 16
    B = 64

    key = jax.random.PRNGKey(0)
    kx, k1, k2, k3, k4 = jax.random.split(key, 5)

    xb = jax.random.normal(kx, (B, N, A1), dtype=jnp.float32)
    w1 = jax.random.uniform(k1, (A2, A1), jnp.float32, -1.0 / A1**0.5, 1.0 / A1**0.5)
    b1 = jax.random.uniform(k2, (A2,), jnp.float32, -1.0 / A1**0.5, 1.0 / A1**0.5)
    w2 = jax.random.uniform(k3, (A1, A2), jnp.float32, -1.0 / A2**0.5, 1.0 / A2**0.5)
    b2 = jax.random.uniform(k4, (A1,), jnp.float32, -1.0 / A2**0.5, 1.0 / A2**0.5)

    # One-time weight packing (pre-transposed, compact).
    params = init_attention_params(w1, b1, w2, b2)

    # Batched path (grid over the batch axis; 2 grid steps of 32 sets here).
    out_b = jax.block_until_ready(attention_forward(xb, *params))
    ref_b = _reference(xb, w1, b1, w2, b2)
    assert out_b.shape == (B, N, A1)
    assert jnp.allclose(out_b, ref_b, atol=1e-5, rtol=1e-5), "batched mismatch vs reference"

    # Single capsule set -- exact semantics of the PyTorch module's forward.
    x1 = xb[0]
    out_1 = jax.block_until_ready(attention_forward(x1, *params))
    ref_1 = _reference(x1, w1, b1, w2, b2)
    assert out_1.shape == (N, A1)
    assert jnp.allclose(out_1, ref_1, atol=1e-5, rtol=1e-5), "single-set mismatch vs reference"

    print("KERNEL_OK")
</pallas_src>

<mosaic_0001>
module attributes {stable_mosaic.version = 11 : i64} {
  func.func @_attention_kernel(%arg0: i32, %arg1: memref<32x8x32xf32, #tpu.memory_space<vmem>>, %arg2: memref<32x16xf32, #tpu.memory_space<vmem>>, %arg3: memref<1x16xf32, #tpu.memory_space<vmem>>, %arg4: memref<16x32xf32, #tpu.memory_space<vmem>>, %arg5: memref<1x32xf32, #tpu.memory_space<vmem>>, %arg6: memref<32x8x32xf32, #tpu.memory_space<vmem>>) attributes {dimension_semantics = [#tpu.dimension_semantics<parallel>], iteration_bounds = array<i64: 2>, scalar_prefetch = 0 : i64, scratch_operands = 0 : i64, tpu.core_type = #tpu.core_type<tc>, window_params = [{transform_indices = @transform_0, window_bounds = array<i64: 32, 8, 32>}, {pipeline_mode = #tpu.pipeline_mode<synchronous>, transform_indices = @transform_1, window_bounds = array<i64: 32, 16>}, {pipeline_mode = #tpu.pipeline_mode<synchronous>, transform_indices = @transform_2, window_bounds = array<i64: 1, 16>}, {pipeline_mode = #tpu.pipeline_mode<synchronous>, transform_indices = @transform_3, window_bounds = array<i64: 16, 32>}, {pipeline_mode = #tpu.pipeline_mode<synchronous>, transform_indices = @transform_4, window_bounds = array<i64: 1, 32>}, {transform_indices = @transform_5, window_bounds = array<i64: 32, 8, 32>}]} {
    %c0 = arith.constant 0 : index
    %c0_0 = arith.constant 0 : index
    %c0_1 = arith.constant 0 : index
    %0 = vector.load %arg1[%c0, %c0_0, %c0_1] : memref<32x8x32xf32, #tpu.memory_space<vmem>>, vector<32x8x32xf32>
    %1 = vector.shape_cast %0 : vector<32x8x32xf32> to vector<256x32xf32>
    %c0_2 = arith.constant 0 : index
    %c0_3 = arith.constant 0 : index
    %2 = vector.load %arg2[%c0_2, %c0_3] : memref<32x16xf32, #tpu.memory_space<vmem>>, vector<32x16xf32>
    %cst = arith.constant dense<0.000000e+00> : vector<256x16xf32>
    %3 = tpu.matmul %1, %2, %cst {dimension_numbers = #tpu.dot_dimension_numbers<[1], [0], [0], [1], [0, 0, 1, 1], [], []>} : vector<256x32xf32>, vector<32x16xf32>, vector<256x16xf32> -> vector<256x16xf32>
    %c0_4 = arith.constant 0 : index
    %c0_5 = arith.constant 0 : index
    %4 = vector.load %arg3[%c0_4, %c0_5] : memref<1x16xf32, #tpu.memory_space<vmem>>, vector<1x16xf32>
    %5 = vector.broadcast %4 : vector<1x16xf32> to vector<256x16xf32>
    %6 = arith.addf %3, %5 : vector<256x16xf32>
    %cst_6 = arith.constant 0.000000e+00 : f32
    %7 = vector.broadcast %cst_6 : f32 to vector<256x16xf32>
    %8 = arith.maximumf %6, %7 : vector<256x16xf32>
    %c0_7 = arith.constant 0 : index
    %c0_8 = arith.constant 0 : index
    %9 = vector.load %arg4[%c0_7, %c0_8] : memref<16x32xf32, #tpu.memory_space<vmem>>, vector<16x32xf32>
    %cst_9 = arith.constant dense<0.000000e+00> : vector<256x32xf32>
    %10 = tpu.matmul %8, %9, %cst_9 {dimension_numbers = #tpu.dot_dimension_numbers<[1], [0], [0], [1], [0, 0, 1, 1], [], []>} : vector<256x16xf32>, vector<16x32xf32>, vector<256x32xf32> -> vector<256x32xf32>
    %c0_10 = arith.constant 0 : index
    %c0_11 = arith.constant 0 : index
    %11 = vector.load %arg5[%c0_10, %c0_11] : memref<1x32xf32, #tpu.memory_space<vmem>>, vector<1x32xf32>
    %12 = vector.broadcast %11 : vector<1x32xf32> to vector<256x32xf32>
    %13 = arith.addf %10, %12 : vector<256x32xf32>
    %14 = vector.shape_cast %13 : vector<256x32xf32> to vector<32x8x32xf32>
    %cst_12 = arith.constant dense<0xFF800000> : vector<32x32xf32>
    %15 = vector.multi_reduction <maximumf>, %14, %cst_12 [1] : vector<32x8x32xf32> to vector<32x32xf32>
    %16 = vector.shape_cast %15 : vector<32x32xf32> to vector<32x1x32xf32>
    %17 = vector.broadcast %16 : vector<32x1x32xf32> to vector<32x8x32xf32>
    %18 = arith.subf %14, %17 : vector<32x8x32xf32>
    %19 = math.exp %18 : vector<32x8x32xf32>
    %cst_13 = arith.constant dense<0.000000e+00> : vector<32x32xf32>
    %20 = vector.multi_reduction <add>, %19, %cst_13 [1] : vector<32x8x32xf32> to vector<32x32xf32>
    %21 = vector.shape_cast %20 : vector<32x32xf32> to vector<32x1x32xf32>
    %22 = tpu.reciprocal %21 : vector<32x1x32xf32> -> vector<32x1x32xf32>
    %23 = vector.broadcast %22 : vector<32x1x32xf32> to vector<32x8x32xf32>
    %24 = arith.mulf %19, %23 : vector<32x8x32xf32>
    %25 = arith.mulf %0, %24 : vector<32x8x32xf32>
    %c0_14 = arith.constant 0 : index
    %c0_15 = arith.constant 0 : index
    %c0_16 = arith.constant 0 : index
    %26 = vector.load %arg6[%c0_14, %c0_15, %c0_16] : memref<32x8x32xf32, #tpu.memory_space<vmem>>, vector<32x8x32xf32>
    tpu.vector_store %arg6[%c0_14, %c0_15, %c0_16], %25 {strides = array<i32>} : memref<32x8x32xf32, #tpu.memory_space<vmem>>, vector<32x8x32xf32>,
    return
  }
  func.func @transform_0(%arg0: i32) -> (i32, i32, i32) {
    %c0_i32 = arith.constant 0 : i32
    %c0_i32_0 = arith.constant 0 : i32
    %c0_i32_1 = arith.constant 0 : i32
    return %arg0, %c0_i32, %c0_i32_0 : i32, i32, i32
  }
  func.func @transform_1(%arg0: i32) -> (i32, i32) {
    %c0_i32 = arith.constant 0 : i32
    %c0_i32_0 = arith.constant 0 : i32
    %c0_i32_1 = arith.constant 0 : i32
    return %c0_i32, %c0_i32_0 : i32, i32
  }
  func.func @transform_2(%arg0: i32) -> (i32, i32) {
    %c0_i32 = arith.constant 0 : i32
    %c0_i32_0 = arith.constant 0 : i32
    %c0_i32_1 = arith.constant 0 : i32
    return %c0_i32, %c0_i32_0 : i32, i32
  }
  func.func @transform_3(%arg0: i32) -> (i32, i32) {
    %c0_i32 = arith.constant 0 : i32
    %c0_i32_0 = arith.constant 0 : i32
    %c0_i32_1 = arith.constant 0 : i32
    return %c0_i32, %c0_i32_0 : i32, i32
  }
  func.func @transform_4(%arg0: i32) -> (i32, i32) {
    %c0_i32 = arith.constant 0 : i32
    %c0_i32_0 = arith.constant 0 : i32
    %c0_i32_1 = arith.constant 0 : i32
    return %c0_i32, %c0_i32_0 : i32, i32
  }
  func.func @transform_5(%arg0: i32) -> (i32, i32, i32) {
    %c0_i32 = arith.constant 0 : i32
    %c0_i32_0 = arith.constant 0 : i32
    %c0_i32_1 = arith.constant 0 : i32
    return %arg0, %c0_i32, %c0_i32_0 : i32, i32, i32
  }
}

</mosaic_0001>

<bundles_post_ra>
// kernel: attention_forward.1
= control target key start
LH: loop header
LB: loop body
LE: loop exit
PB: predicated region body
PF: predicated region fallthrough
CT: control target
= control target key end

     0   :  { %s2141_s18 = smov 0   ;;  %s2785_s0 = inlined_call_operand.vmem [shape: f32[64,8,32], index: 0, kind: input, shape index: {}]   ;;  %s2786_s1 = inlined_call_operand.vmem [shape: f32[32,16], index: 1, kind: input, shape index: {}]   ;;  %s2787_s2 = inlined_call_operand.vmem [shape: f32[1,16], index: 2, kind: input, shape index: {}]   ;;  %s2788_s3 = inlined_call_operand.vmem [shape: f32[16,32], index: 3, kind: input, shape index: {}]   ;;  %s2789_s4 = inlined_call_operand.vmem [shape: f32[1,32], index: 4, kind: input, shape index: {}]   ;;  %s2790_s5 = inlined_call_operand.vmem [shape: f32[64,8,32], index: 5, kind: output, shape index: {}]  }
   0x1 LB: > { %s1684_s19 = sadd.s32 4294967295, %s2109_s18   ;;  %p1688_p0 = scmp.ge.s32.totalorder %s2109_s18, 1  ;;  %s2109_s18 = sphi %s2141_s18, %s15_s18  }
   0x2   : > { %p188_p1 = scmp.lt.s32.totalorder %s2109_s18, 3 }
   0x4   : > { %p189_p2 = pnand %p1688_p0, %p188_p1 }
   0x5   : > { %s1689_s24 = sshll.u32 (!%p189_p2), %s1684_s19, 5 }
   0x6   : > { %192 = sbr.rel (%p189_p2) target bundleno = 623 (0x26f), region = 40  ;;  %p217_p3 = scmp.lt.s32.totalorder (!%p189_p2), %s1689_s24, 63 }
   0xb   : > { %v263_v0 = vld [vmem:[%s2786_s1 + $0x18] sm:$0xff]  ;;  %v262_v1 = vld [vmem:[%s2786_s1 + $0x10] sm:$0xff]  ;;  %v261_v2 = vld [vmem:[%s2786_s1 + $0x8] sm:$0xff]  ;;  %s2792_s24 = smov (!%p217_p3, %s1689_s24), 63  ;;  %vm271_vm0 = vcmask 261120   ;;  %vm634_vm1 = vcmask 130048  }
   0xc   : > { %1831 = vmatprep.subr.mxu0 %v263_v0  ;;  %v260_v3 = vld [vmem:[%s2786_s1] sm:$0xff]  ;;  %s1690_s29 = sshll.u32 %s2792_s24, 3  ;;  %v626_v36 = vld [vmem:[%s2788_s3 + $0x8] sm:$0xff] }
   0xd   : > { %1832 = vmatpush3.msra.mxu0 %v263_v0  ;;  %s2169_s7 = scalar_lea.vmem %s2785_s0, %s1690_s29  ;;  %1887 = vmatprep.subr.mxu1 %v626_v36  ;;  %v625_v37 = vld [vmem:[%s2788_s3] sm:$0xff]  ;;  %s2467_s19 = scalar_lea.vmem %s2790_s5, %s1690_s29 }
   0xe   : > { %1833 = vmatprep.subr.mxu0 %v262_v1  ;;  %v2172_v4 = vld [vmem:[%s2169_s7] sm:$0xff]  ;;  %v2175_v5 = vld [vmem:[%s2169_s7 + $0x8] sm:$0xff]  ;;  %v2178_v6 = vld [vmem:[%s2169_s7 + $0x10] sm:$0xff]  ;;  %1888 = vmatpush3.msra.mxu1 %v626_v36 }
   0xf   : > { %1834 = vmatpush3.msra.mxu0 %v262_v1  ;;  %1839 = vmatprep.mubr.msk.f32.mxu0 %vm271_vm0, %v2172_v4  ;;  %v2187_v7 = vld [vmem:[%s2169_s7 + $0x18] sm:$0xff]  ;;  %v232_v8 = vld [vmem:[%s2169_s7 + $0x20] sm:$0xff]  ;;  %v2194_v9 = vld [vmem:[%s2169_s7 + $0x28] sm:$0xff] }
  0x10   : > { %1835 = vmatprep.subr.mxu0 %v261_v2  ;;  %v234_v10 = vld [vmem:[%s2169_s7 + $0x30] sm:$0xff]  ;;  %v235_v11 = vld [vmem:[%s2169_s7 + $0x38] sm:$0xff]  ;;  %v236_v12 = vld [vmem:[%s2169_s7 + $0x40] sm:$0xff]  ;;  %1889 = vmatprep.subr.mxu1 %v625_v37 }
  0x11   : > { %1836 = vmatpush3.msra.mxu0 %v261_v2  ;;  %v237_v13 = vld [vmem:[%s2169_s7 + $0x48] sm:$0xff]  ;;  %v238_v14 = vld [vmem:[%s2169_s7 + $0x50] sm:$0xff]  ;;  %v239_v15 = vld [vmem:[%s2169_s7 + $0x58] sm:$0xff]  ;;  %1890 = vmatpush3.msra.mxu1 %v625_v37 }
  0x12   : > { %1837 = vmatprep.subr.mxu0 %v260_v3  ;;  %v240_v16 = vld [vmem:[%s2169_s7 + $0x60] sm:$0xff]  ;;  %v241_v17 = vld [vmem:[%s2169_s7 + $0x68] sm:$0xff]  ;;  %v242_v18 = vld [vmem:[%s2169_s7 + $0x70] sm:$0xff] }
  0x13   : > { %1838 = vmatpush3.msra.mxu0 %v260_v3  ;;  %v243_v19 = vld [vmem:[%s2169_s7 + $0x78] sm:$0xff]  ;;  %v244_v20 = vld [vmem:[%s2169_s7 + $0x80] sm:$0xff]  ;;  %v245_v21 = vld [vmem:[%s2169_s7 + $0x88] sm:$0xff] }
  0x14   : > { %1840 = vmatmul.mubr.msk.f32.vlgmr.msra.gmra.mxu0 %vm271_vm0, %v2175_v5  ;;  %v246_v22 = vld [vmem:[%s2169_s7 + $0x90] sm:$0xff]  ;;  %v247_v23 = vld [vmem:[%s2169_s7 + $0x98] sm:$0xff]  ;;  %v248_v24 = vld [vmem:[%s2169_s7 + $0xa0] sm:$0xff] }
  0x15   : > { %1842 = vmatprep.mubr.msk.f32.mxu0 %vm271_vm0, %v2178_v6  ;;  %v249_v25 = vld [vmem:[%s2169_s7 + $0xa8] sm:$0xff]  ;;  %v250_v26 = vld [vmem:[%s2169_s7 + $0xb0] sm:$0xff]  ;;  %v251_v27 = vld [vmem:[%s2169_s7 + $0xb8] sm:$0xff] }
  0x16   : > { %v252_v28 = vld [vmem:[%s2169_s7 + $0xc0] sm:$0xff]  ;;  %v253_v29 = vld [vmem:[%s2169_s7 + $0xc8] sm:$0xff]  ;;  %v254_v30 = vld [vmem:[%s2169_s7 + $0xd0] sm:$0xff] }
  0x17   : > { %v255_v31 = vld [vmem:[%s2169_s7 + $0xd8] sm:$0xff]  ;;  %v256_v32 = vld [vmem:[%s2169_s7 + $0xe0] sm:$0xff]  ;;  %v257_v33 = vld [vmem:[%s2169_s7 + $0xe8] sm:$0xff] }
  0x18   : > { %1843 = vmatmul.mubr.msk.f32.gmra.mxu0 %vm271_vm0, %v2187_v7  ;;  %v258_v34 = vld [vmem:[%s2169_s7 + $0xf0] sm:$0xff]  ;;  %v259_v35 = vld [vmem:[%s2169_s7 + $0xf8] sm:$0xff]  ;;  %v2259_v38 = vld [vmem:[%s2787_s2] ss:$0 sm:$0xff] }
  0x19   : > { %1845 = vmatprep.mubr.msk.f32.mxu0 %vm271_vm0, %v232_v8 }
  0x1c   : > { %1846 = vmatmul.mubr.msk.f32.gmra.mxu0 %vm271_vm0, %v2194_v9 }
  0x1d   : > { %1848 = vmatprep.mubr.msk.f32.mxu0 %vm271_vm0, %v234_v10 }
  0x20   : > { %1849 = vmatmul.mubr.msk.f32.gmra.mxu0 %vm271_vm0, %v235_v11 }
  0x21   : > { %1851 = vmatprep.mubr.msk.f32.mxu0 %vm271_vm0, %v236_v12 }
  0x24   : > { %1852 = vmatmul.mubr.msk.f32.gmra.mxu0 %vm271_vm0, %v237_v13 }
  0x25   : > { %1854 = vmatprep.mubr.msk.f32.mxu0 %vm271_vm0, %v238_v14 }
  0x28   : > { %1855 = vmatmul.mubr.msk.f32.gmra.mxu0 %vm271_vm0, %v239_v15 }
  0x29   : > { %1857 = vmatprep.mubr.msk.f32.mxu0 %vm271_vm0, %v240_v16 }
  0x2c   : > { %1858 = vmatmul.mubr.msk.f32.gmra.mxu0 %vm271_vm0, %v241_v17 }
  0x2d   : > { %1860 = vmatprep.mubr.msk.f32.mxu0 %vm271_vm0, %v242_v18 }
  0x30   : > { %1861 = vmatmul.mubr.msk.f32.gmra.mxu0 %vm271_vm0, %v243_v19 }
  0x31   : > { %1863 = vmatprep.mubr.msk.f32.mxu0 %vm271_vm0, %v244_v20 }
  0x34   : > { %1864 = vmatmul.mubr.msk.f32.gmra.mxu0 %vm271_vm0, %v245_v21 }
  0x35   : > { %1866 = vmatprep.mubr.msk.f32.mxu0 %vm271_vm0, %v246_v22 }
  0x38   : > { %1867 = vmatmul.mubr.msk.f32.gmra.mxu0 %vm271_vm0, %v247_v23 }
  0x39   : > { %1869 = vmatprep.mubr.msk.f32.mxu0 %vm271_vm0, %v248_v24 }
  0x3c   : > { %1870 = vmatmul.mubr.msk.f32.gmra.mxu0 %vm271_vm0, %v249_v25 }
  0x3d   : > { %1872 = vmatprep.mubr.msk.f32.mxu0 %vm271_vm0, %v250_v26 }
  0x40   : > { %1873 = vmatmul.mubr.msk.f32.gmra.mxu0 %vm271_vm0, %v251_v27 }
  0x41   : > { %1875 = vmatprep.mubr.msk.f32.mxu0 %vm271_vm0, %v252_v28 }
  0x44   : > { %1876 = vmatmul.mubr.msk.f32.gmra.mxu0 %vm271_vm0, %v253_v29 }
  0x45   : > { %1878 = vmatprep.mubr.msk.f32.mxu0 %vm271_vm0, %v254_v30 }
  0x48   : > { %1879 = vmatmul.mubr.msk.f32.gmra.mxu0 %vm271_vm0, %v255_v31 }
  0x49   : > { %1881 = vmatprep.mubr.msk.f32.mxu0 %vm271_vm0, %v256_v32 }
  0x4c   : > { %1882 = vmatmul.mubr.msk.f32.gmra.mxu0 %vm271_vm0, %v257_v33 }
  0x4d   : > { %1884 = vmatprep.mubr.msk.f32.mxu0 %vm271_vm0, %v258_v34 }
  0x50   : > { %1885 = vmatmul.mubr.msk.f32.gmra.mxu0 %vm271_vm0, %v259_v35 }
  0xd4   : > { %v1841_v39 = vpop.f32.mrf.mxu0 }
  0xd5   : > { %v440_v40 = vadd.f32 %v1841_v39, %v2259_v38 }
  0xd6   : > { %v434_v41 = vpop.f32.mrf.mxu0 }
  0xd7   : > { %v435_v42 = vadd.f32 %v2259_v38, %v434_v41  ;;  %v594_v45 = vmax.f32 %v440_v40, 0.0 }
  0xd8   : > { %v1844_v43 = vpop.f32.mrf.mxu0 }
  0xd9   : > { %v593_v44 = vmax.f32 %v435_v42, 0.0  ;;  %v450_v46 = vadd.f32 %v1844_v43, %v2259_v38 }
  0xda   : > { %v444_v47 = vpop.f32.mrf.mxu0 }
  0xdb   : > { %v445_v48 = vadd.f32 %v2259_v38, %v444_v47  ;;  %1891 = vmatprep.mubr.msk.f32.mxu1 %vm634_vm1, %v593_v44  ;;  %v596_v51 = vmax.f32 %v450_v46, 0.0 }
  0xdc   : > { %v1847_v49 = vpop.f32.mrf.mxu0  ;;  %1892 = vmatmul.mubr.msk.f32.vlgmr.msra.gmra.mxu1 %vm634_vm1, %v594_v45 }
  0xdd   : > { %v595_v50 = vmax.f32 %v445_v48, 0.0  ;;  %v460_v52 = vadd.f32 %v1847_v49, %v2259_v38 }
  0xde   : > { %v454_v53 = vpop.f32.mrf.mxu0 }
  0xdf   : > { %v455_v54 = vadd.f32 %v2259_v38, %v454_v53  ;;  %1894 = vmatprep.mubr.msk.f32.mxu1 %vm634_vm1, %v595_v50  ;;  %v598_v57 = vmax.f32 %v460_v52, 0.0 }
  0xe0   : > { %v1850_v55 = vpop.f32.mrf.mxu0  ;;  %1895 = vmatmul.mubr.msk.f32.gmra.mxu1 %vm634_vm1, %v596_v51 }
  0xe1   : > { %v597_v56 = vmax.f32 %v455_v54, 0.0  ;;  %v470_v58 = vadd.f32 %v1850_v55, %v2259_v38 }
  0xe2   : > { %v464_v59 = vpop.f32.mrf.mxu0 }
  0xe3   : > { %v465_v60 = vadd.f32 %v2259_v38, %v464_v59  ;;  %1897 = vmatprep.mubr.msk.f32.mxu1 %vm634_vm1, %v597_v56  ;;  %v600_v63 = vmax.f32 %v470_v58, 0.0 }
  0xe4   : > { %v1853_v61 = vpop.f32.mrf.mxu0  ;;  %1898 = vmatmul.mubr.msk.f32.gmra.mxu1 %vm634_vm1, %v598_v57 }
  0xe5   : > { %v599_v62 = vmax.f32 %v465_v60, 0.0  ;;  %v480_v0 = vadd.f32 %v1853_v61, %v2259_v38 }
  0xe6   : > { %v474_v1 = vpop.f32.mrf.mxu0 }
  0xe7   : > { %v475_v2 = vadd.f32 %v2259_v38, %v474_v1  ;;  %1900 = vmatprep.mubr.msk.f32.mxu1 %vm634_vm1, %v599_v62  ;;  %v602_v10 = vmax.f32 %v480_v0, 0.0 }
  0xe8   : > { %v1856_v3 = vpop.f32.mrf.mxu0  ;;  %1901 = vmatmul.mubr.msk.f32.gmra.mxu1 %vm634_vm1, %v600_v63 }
  0xe9   : > { %v601_v8 = vmax.f32 %v475_v2, 0.0  ;;  %v490_v11 = vadd.f32 %v1856_v3, %v2259_v38 }
  0xea   : > { %v484_v12 = vpop.f32.mrf.mxu0 }
  0xeb   : > { %v485_v13 = vadd.f32 %v2259_v38, %v484_v12  ;;  %1903 = vmatprep.mubr.msk.f32.mxu1 %vm634_vm1, %v601_v8  ;;  %v604_v16 = vmax.f32 %v490_v11, 0.0 }
  0xec   : > { %v1859_v14 = vpop.f32.mrf.mxu0  ;;  %1904 = vmatmul.mubr.msk.f32.gmra.mxu1 %vm634_vm1, %v602_v10 }
  0xed   : > { %v603_v15 = vmax.f32 %v485_v13, 0.0  ;;  %v500_v17 = vadd.f32 %v1859_v14, %v2259_v38 }
  0xee   : > { %v494_v18 = vpop.f32.mrf.mxu0 }
  0xef   : > { %v495_v19 = vadd.f32 %v2259_v38, %v494_v18  ;;  %1906 = vmatprep.mubr.msk.f32.mxu1 %vm634_vm1, %v603_v15  ;;  %v606_v22 = vmax.f32 %v500_v17, 0.0  ;;  %v2328_v18 = vld [vmem:[%s2789_s4] ss:$0 sm:$0xff] }
  0xf0   : > { %v1862_v20 = vpop.f32.mrf.mxu0  ;;  %1907 = vmatmul.mubr.msk.f32.gmra.mxu1 %vm634_vm1, %v604_v16 }
  0xf1   : > { %v605_v21 = vmax.f32 %v495_v19, 0.0  ;;  %v510_v23 = vadd.f32 %v1862_v20, %v2259_v38 }
  0xf2   : > { %v504_v24 = vpop.f32.mrf.mxu0 }
  0xf3   : > { %v505_v25 = vadd.f32 %v2259_v38, %v504_v24  ;;  %1909 = vmatprep.mubr.msk.f32.mxu1 %vm634_vm1, %v605_v21  ;;  %v608_v28 = vmax.f32 %v510_v23, 0.0 }
  0xf4   : > { %v1865_v26 = vpop.f32.mrf.mxu0  ;;  %1910 = vmatmul.mubr.msk.f32.gmra.mxu1 %vm634_vm1, %v606_v22 }
  0xf5   : > { %v607_v27 = vmax.f32 %v505_v25, 0.0  ;;  %v520_v29 = vadd.f32 %v1865_v26, %v2259_v38 }
  0xf6   : > { %v514_v30 = vpop.f32.mrf.mxu0 }
  0xf7   : > { %v515_v31 = vadd.f32 %v2259_v38, %v514_v30  ;;  %1912 = vmatprep.mubr.msk.f32.mxu1 %vm634_vm1, %v607_v27  ;;  %v610_v34 = vmax.f32 %v520_v29, 0.0 }
  0xf8   : > { %v1868_v32 = vpop.f32.mrf.mxu0  ;;  %1913 = vmatmul.mubr.msk.f32.gmra.mxu1 %vm634_vm1, %v608_v28 }
  0xf9   : > { %v609_v33 = vmax.f32 %v515_v31, 0.0  ;;  %v530_v35 = vadd.f32 %v1868_v32, %v2259_v38 }
  0xfa   : > { %v524_v36 = vpop.f32.mrf.mxu0 }
  0xfb   : > { %v525_v37 = vadd.f32 %v2259_v38, %v524_v36  ;;  %1915 = vmatprep.mubr.msk.f32.mxu1 %vm634_vm1, %v609_v33  ;;  %v612_v41 = vmax.f32 %v530_v35, 0.0 }
  0xfc   : > { %v1871_v39 = vpop.f32.mrf.mxu0  ;;  %1916 = vmatmul.mubr.msk.f32.gmra.mxu1 %vm634_vm1, %v610_v34 }
  0xfd   : > { %v611_v40 = vmax.f32 %v525_v37, 0.0  ;;  %v540_v42 = vadd.f32 %v1871_v39, %v2259_v38 }
  0xfe   : > { %v534_v43 = vpop.f32.mrf.mxu0 }
  0xff   : > { %v535_v44 = vadd.f32 %v2259_v38, %v534_v43  ;;  %1918 = vmatprep.mubr.msk.f32.mxu1 %vm634_vm1, %v611_v40  ;;  %v614_v47 = vmax.f32 %v540_v42, 0.0 }
 0x100   : > { %v1874_v45 = vpop.f32.mrf.mxu0  ;;  %1919 = vmatmul.mubr.msk.f32.gmra.mxu1 %vm634_vm1, %v612_v41 }
 0x101   : > { %v613_v46 = vmax.f32 %v535_v44, 0.0  ;;  %v550_v48 = vadd.f32 %v1874_v45, %v2259_v38 }
 0x102   : > { %v544_v49 = vpop.f32.mrf.mxu0 }
 0x103   : > { %v545_v50 = vadd.f32 %v2259_v38, %v544_v49  ;;  %1921 = vmatprep.mubr.msk.f32.mxu1 %vm634_vm1, %v613_v46  ;;  %v616_v53 = vmax.f32 %v550_v48, 0.0 }
 0x104   : > { %v1877_v51 = vpop.f32.mrf.mxu0  ;;  %1922 = vmatmul.mubr.msk.f32.gmra.mxu1 %vm634_vm1, %v614_v47 }
 0x105   : > { %v615_v52 = vmax.f32 %v545_v50, 0.0  ;;  %v560_v54 = vadd.f32 %v1877_v51, %v2259_v38 }
 0x106   : > { %v554_v55 = vpop.f32.mrf.mxu0 }
 0x107   : > { %v555_v56 = vadd.f32 %v2259_v38, %v554_v55  ;;  %1924 = vmatprep.mubr.msk.f32.mxu1 %vm634_vm1, %v615_v52  ;;  %v618_v59 = vmax.f32 %v560_v54, 0.0 }
 0x108   : > { %v1880_v57 = vpop.f32.mrf.mxu0  ;;  %1925 = vmatmul.mubr.msk.f32.gmra.mxu1 %vm634_vm1, %v616_v53 }
 0x109   : > { %v617_v58 = vmax.f32 %v555_v56, 0.0  ;;  %v570_v60 = vadd.f32 %v1880_v57, %v2259_v38 }
 0x10a   : > { %v564_v61 = vpop.f32.mrf.mxu0 }
 0x10b   : > { %v565_v62 = vadd.f32 %v2259_v38, %v564_v61  ;;  %1927 = vmatprep.mubr.msk.f32.mxu1 %vm634_vm1, %v617_v58  ;;  %v620_v1 = vmax.f32 %v570_v60, 0.0 }
 0x10c   : > { %v1883_v63 = vpop.f32.mrf.mxu0  ;;  %1928 = vmatmul.mubr.msk.f32.gmra.mxu1 %vm634_vm1, %v618_v59 }
 0x10d   : > { %v619_v0 = vmax.f32 %v565_v62, 0.0  ;;  %v580_v2 = vadd.f32 %v1883_v63, %v2259_v38 }
 0x10e   : > { %v574_v3 = vpop.f32.mrf.mxu0 }
 0x10f   : > { %v575_v8 = vadd.f32 %v2259_v38, %v574_v3  ;;  %1930 = vmatprep.mubr.msk.f32.mxu1 %vm634_vm1, %v619_v0  ;;  %v622_v12 = vmax.f32 %v580_v2, 0.0 }
 0x110   : > { %v1886_v10 = vpop.f32.mrf.mxu0  ;;  %1931 = vmatmul.mubr.msk.f32.gmra.mxu1 %vm634_vm1, %v620_v1 }
 0x111   : > { %v621_v11 = vmax.f32 %v575_v8, 0.0  ;;  %v590_v13 = vadd.f32 %v1886_v10, %v2259_v38 }
 0x112   : > { %v584_v14 = vpop.f32.mrf.mxu0 }
 0x113   : > { %v585_v15 = vadd.f32 %v2259_v38, %v584_v14  ;;  %1933 = vmatprep.mubr.msk.f32.mxu1 %vm634_vm1, %v621_v11  ;;  %v624_v17 = vmax.f32 %v590_v13, 0.0 }
 0x114   : > { %1934 = vmatmul.mubr.msk.f32.gmra.mxu1 %vm634_vm1, %v622_v12 }
 0x115   : > { %v623_v16 = vmax.f32 %v585_v15, 0.0 }
 0x117   : > { %1936 = vmatprep.mubr.msk.f32.mxu1 %vm634_vm1, %v623_v16 }
 0x118   : > { %1937 = vmatmul.mubr.msk.f32.gmra.mxu1 %vm634_vm1, %v624_v17 }
 0x19c   : > { %v1893_v19 = vpop.f32.mrf.mxu1 }
 0x19d   : > { %v803_v20 = vadd.f32 %v1893_v19, %v2328_v18 }
 0x19e   : > { %v797_v21 = vpop.f32.mrf.mxu1 }
 0x19f   : > { %v963_v38 = vsel %vm271_vm0, %v803_v20, -inf  ;;  %v798_v22 = vadd.f32 %v2328_v18, %v797_v21 }
 0x1a0   : > { %v964_v23 = vrot.slane %v963_v38, 4  ;;  %v1896_v24 = vpop.f32.mrf.mxu1 }
 0x1a1   : > { %v956_v25 = vsel %vm271_vm0, %v798_v22, -inf  ;;  %v2335_v26 = vadd.f32 %v1896_v24, %v2328_v18 }
 0x1a2   : > { %v965_v27 = vmax.f32 %v963_v38, %v964_v23  ;;  %v957_v28 = vrot.slane %v956_v25, 4  ;;  %v807_v29 = vpop.f32.mrf.mxu1 }
 0x1a3   : > { %v977_v30 = vsel %vm271_vm0, %v2335_v26, -inf  ;;  %v2340_v31 = vadd.f32 %v2328_v18, %v807_v29 }
 0x1a4   : > { %v966_v32 = vrot.slane %v965_v27, 2  ;;  %v958_v33 = vmax.f32 %v956_v25, %v957_v28  ;;  %v978_v34 = vrot.slane %v977_v30, 4  ;;  %v1899_v35 = vpop.f32.mrf.mxu1 }
 0x1a5   : > { %v970_v36 = vsel %vm271_vm0, %v2340_v31, -inf  ;;  %v2345_v37 = vadd.f32 %v1899_v35, %v2328_v18 }
 0x1a6   : > { %v967_v39 = vmax.f32 %v965_v27, %v966_v32  ;;  %v959_v40 = vrot.slane %v958_v33, 2  ;;  %v979_v41 = vmax.f32 %v977_v30, %v978_v34  ;;  %v971_v42 = vrot.slane %v970_v36, 4  ;;  %v817_v43 = vpop.f32.mrf.mxu1 }
 0x1a7   : > { %v991_v44 = vsel %vm271_vm0, %v2345_v37, -inf  ;;  %v2350_v45 = vadd.f32 %v2328_v18, %v817_v43 }
 0x1a8   : > { %v968_v46 = vrot.slane %v967_v39, 1  ;;  %v960_v47 = vmax.f32 %v958_v33, %v959_v40  ;;  %v980_v48 = vrot.slane %v979_v41, 2  ;;  %v972_v49 = vmax.f32 %v970_v36, %v971_v42  ;;  %v1902_v50 = vpop.f32.mrf.mxu1 }
 0x1a9   : > { %v992_v51 = vrot.slane %v991_v44, 4  ;;  %v984_v52 = vsel %vm271_vm0, %v2350_v45, -inf  ;;  %v2355_v53 = vadd.f32 %v1902_v50, %v2328_v18 }
 0x1aa   : > { %v969_v54 = vmax.f32 %v967_v39, %v968_v46  ;;  %v961_v55 = vrot.slane %v960_v47, 1  ;;  %v981_v56 = vmax.f32 %v979_v41, %v980_v48  ;;  %v973_v57 = vrot.slane %v972_v49, 2  ;;  %v827_v58 = vpop.f32.mrf.mxu1 }
 0x1ab   : > { %v993_v59 = vmax.f32 %v991_v44, %v992_v51  ;;  %v985_v60 = vrot.slane %v984_v52, 4  ;;  %v1005_v61 = vsel %vm271_vm0, %v2355_v53, -inf  ;;  %v2360_v62 = vadd.f32 %v2328_v18, %v827_v58 }
 0x1ac   : > { %v1181_v63 = vsub.f32 %v803_v20, %v969_v54  ;;  %v962_v0 = vmax.f32 %v960_v47, %v961_v55  ;;  %v982_v1 = vrot.slane %v981_v56, 1  ;;  %v974_v2 = vmax.f32 %v972_v49, %v973_v57  ;;  %v1905_v3 = vpop.f32.mrf.mxu1 }
 0x1ad   : > { %v994_v8 = vrot.slane %v993_v59, 2  ;;  %v986_v10 = vmax.f32 %v984_v52, %v985_v60  ;;  %v1006_v11 = vrot.slane %v1005_v61, 4  ;;  %v998_v12 = vsel %vm271_vm0, %v2360_v62, -inf }
 0x1ae   : > { %v1214_v13 = vmul.f32 1.442695, %v1181_v63  ;;  %v1180_v14 = vsub.f32 %v798_v22, %v962_v0  ;;  %v983_v15 = vmax.f32 %v981_v56, %v982_v1  ;;  %v975_v16 = vrot.slane %v974_v2, 1  ;;  %v837_v17 = vpop.f32.mrf.mxu1 }
 0x1af   : > { %v995_v19 = vmax.f32 %v993_v59, %v994_v8  ;;  %v987_v21 = vrot.slane %v986_v10, 2  ;;  %v1007_v38 = vmax.f32 %v1005_v61, %v1006_v11  ;;  %v999_v23 = vrot.slane %v998_v12, 4 }
 0x1b0   : > { %1947 = vpow2.f32 %v1214_v13  ;;  %v1212_v20 = vmul.f32 1.442695, %v1180_v14  ;;  %v1183_v24 = vsub.f32 %v2335_v26, %v983_v15  ;;  %v976_v25 = vmax.f32 %v974_v2, %v975_v16  ;;  %v1908_v27 = vpop.f32.mrf.mxu1 }
 0x1b1   : > { %v996_v28 = vrot.slane %v995_v19, 1  ;;  %v988_v29 = vmax.f32 %v986_v10, %v987_v21  ;;  %v1008_v30 = vrot.slane %v1007_v38, 2  ;;  %v1000_v32 = vmax.f32 %v998_v12, %v999_v23 }
 0x1b2   : > { %1949 = vpow2.f32 %v1212_v20  ;;  %v1218_v33 = vmul.f32 1.442695, %v1183_v24  ;;  %v1182_v22 = vsub.f32 %v2340_v31, %v976_v25  ;;  %v2367_v34 = vadd.f32 %v1905_v3, %v2328_v18  ;;  %v847_v35 = vpop.f32.mrf.mxu1 }
 0x1b3   : > { %v997_v36 = vmax.f32 %v995_v19, %v996_v28  ;;  %v989_v39 = vrot.slane %v988_v29, 1  ;;  %v1009_v40 = vmax.f32 %v1007_v38, %v1008_v30  ;;  %v1001_v41 = vrot.slane %v1000_v32, 2 }
 0x1b4   : > { %1951 = vpow2.f32 %v1218_v33  ;;  %v1216_v26 = vmul.f32 1.442695, %v1182_v22  ;;  %v1019_v42 = vsel %vm271_vm0, %v2367_v34, -inf  ;;  %v2372_v43 = vadd.f32 %v2328_v18, %v837_v17  ;;  %v1911_v51 = vpop.f32.mrf.mxu1 }
 0x1b5   : > { %v1185_v44 = vsub.f32 %v2345_v37, %v997_v36  ;;  %v990_v46 = vmax.f32 %v988_v29, %v989_v39  ;;  %v1010_v31 = vrot.slane %v1009_v40, 1  ;;  %v1002_v47 = vmax.f32 %v1000_v32, %v1001_v41 }
 0x1b6   : > { %1953 = vpow2.f32 %v1216_v26  ;;  %v1020_v48 = vrot.slane %v1019_v42, 4  ;;  %v1012_v49 = vsel %vm271_vm0, %v2372_v43, -inf  ;;  %v2378_v50 = vadd.f32 %v1908_v27, %v2328_v18  ;;  %v857_v3 = vpop.f32.mrf.mxu1 }
 0x1b7   : > { %v1222_v52 = vmul.f32 1.442695, %v1185_v44  ;;  %v1184_v54 = vsub.f32 %v2350_v45, %v990_v46  ;;  %v1011_v55 = vmax.f32 %v1009_v40, %v1010_v31  ;;  %v1003_v56 = vrot.slane %v1002_v47, 1 }
 0x1b8   : > { %v1021_v57 = vmax.f32 %v1019_v42, %v1020_v48  ;;  %v1013_v58 = vrot.slane %v1012_v49, 4  ;;  %v1033_v37 = vsel %vm271_vm0, %v2378_v50, -inf  ;;  %v2384_v59 = vadd.f32 %v2328_v18, %v847_v35 }
 0x1b9   : > { %1955 = vpow2.f32 %v1222_v52  ;;  %v1220_v60 = vmul.f32 1.442695, %v1184_v54  ;;  %v1187_v61 = vsub.f32 %v2355_v53, %v1011_v55  ;;  %v1004_v63 = vmax.f32 %v1002_v47, %v1003_v56 }
 0x1ba   : > { %v1022_v0 = vrot.slane %v1021_v57, 2  ;;  %v1014_v1 = vmax.f32 %v1012_v49, %v1013_v58  ;;  %v1034_v2 = vrot.slane %v1033_v37, 4  ;;  %v1026_v45 = vsel %vm271_vm0, %v2384_v59, -inf }
 0x1bb   : > { %1957 = vpow2.f32 %v1220_v60  ;;  %v1226_v8 = vmul.f32 1.442695, %v1187_v61  ;;  %v1186_v10 = vsub.f32 %v2360_v62, %v1004_v63  ;;  %v1027_v11 = vrot.slane %v1026_v45, 4 }
 0x1bc   : > { %v1023_v12 = vmax.f32 %v1021_v57, %v1022_v0  ;;  %v1015_v13 = vrot.slane %v1014_v1, 2  ;;  %v1035_v14 = vmax.f32 %v1033_v37, %v1034_v2  ;;  %v2391_v15 = vadd.f32 %v1911_v51, %v2328_v18 }
 0x1bd   : > { %v2393_v53 = vpop.eup %1947  ;;  %1959 = vpow2.f32 %v1226_v8  ;;  %v1224_v16 = vmul.f32 1.442695, %v1186_v10  ;;  %v1028_v17 = vmax.f32 %v1026_v45, %v1027_v11  ;;  %v2396_v19 = vadd.f32 %v2328_v18, %v857_v3 }
 0x1be   : > { %v1283_v21 = vsel %vm271_vm0, %v2393_v53, 0.0  ;;  %v1024_v38 = vrot.slane %v1023_v12, 1  ;;  %v1016_v62 = vmax.f32 %v1014_v1, %v1015_v13  ;;  %v1036_v23 = vrot.slane %v1035_v14, 2 }
 0x1bf   : > { %v2400_v20 = vpop.eup %1949  ;;  %v1284_v24 = vrot.slane %v1283_v21, 4  ;;  %1961 = vpow2.f32 %v1224_v16  ;;  %v1029_v25 = vrot.slane %v1028_v17, 2  ;;  %v2404_v27 = vsel %vm271_vm0, %v2391_v15, -inf }
 0x1c0   : > { %v1276_v28 = vsel %vm271_vm0, %v2400_v20, 0.0  ;;  %v1025_v29 = vmax.f32 %v1023_v12, %v1024_v38  ;;  %v1017_v30 = vrot.slane %v1016_v62, 1  ;;  %v1037_v32 = vmax.f32 %v1035_v14, %v1036_v23 }
 0x1c1   : > { %v2408_v33 = vpop.eup %1951  ;;  %v1285_v22 = vadd.f32 %v1284_v24, %v1283_v21  ;;  %v1277_v35 = vrot.slane %v1276_v28, 4  ;;  %v1030_v36 = vmax.f32 %v1028_v17, %v1029_v25  ;;  %v1048_v39 = vrot.slane %v2404_v27, 4 }
 0x1c2   : > { %v1297_v40 = vsel %vm271_vm0, %v2408_v33, 0.0  ;;  %v1189_v41 = vsub.f32 %v2367_v34, %v1025_v29  ;;  %v1018_v26 = vmax.f32 %v1016_v62, %v1017_v30  ;;  %v1038_v42 = vrot.slane %v1037_v32, 1 }
 0x1c3   : > { %v2414_v44 = vpop.eup %1953  ;;  %v1286_v46 = vrot.slane %v1285_v22, 2  ;;  %v1278_v31 = vadd.f32 %v1277_v35, %v1276_v28  ;;  %v1298_v47 = vrot.slane %v1297_v40, 4  ;;  %v1031_v48 = vrot.slane %v1030_v36, 1  ;;  %v1914_v28 = vpop.f32.mrf.mxu1 }
 0x1c4   : > { %v1290_v49 = vsel %vm271_vm0, %v2414_v44, 0.0  ;;  %v1230_v51 = vmul.f32 1.442695, %v1189_v41  ;;  %v1188_v52 = vsub.f32 %v2372_v43, %v1018_v26  ;;  %v1039_v54 = vmax.f32 %v1037_v32, %v1038_v42 }
 0x1c5   : > { %v1287_v55 = vadd.f32 %v1286_v46, %v1285_v22  ;;  %v1279_v56 = vrot.slane %v1278_v31, 2  ;;  %v1299_v57 = vadd.f32 %v1298_v47, %v1297_v40  ;;  %v1291_v58 = vrot.slane %v1290_v49, 4 }
 0x1c6   : > { %v2419_v34 = vpop.eup %1955  ;;  %1963 = vpow2.f32 %v1230_v51  ;;  %v1228_v37 = vmul.f32 1.442695, %v1188_v52  ;;  %v1191_v60 = vsub.f32 %v2378_v50, %v1039_v54  ;;  %v1032_v61 = vmax.f32 %v1030_v36, %v1031_v48 }
 0x1c7   : > { %v1288_v63 = vrot.slane %v1287_v55, 1  ;;  %v1280_v0 = vadd.f32 %v1279_v56, %v1278_v31  ;;  %v1300_v1 = vrot.slane %v1299_v57, 2  ;;  %v1292_v2 = vadd.f32 %v1291_v58, %v1290_v49  ;;  %v867_v49 = vpop.f32.mrf.mxu1 }
 0x1c8   : > { %v2422_v45 = vpop.eup %1957  ;;  %v1311_v43 = vsel %vm271_vm0, %v2419_v34, 0.0  ;;  %1965 = vpow2.f32 %v1228_v37  ;;  %v1234_v3 = vmul.f32 1.442695, %v1191_v60  ;;  %v1190_v8 = vsub.f32 %v2384_v59, %v1032_v61 }
 0x1c9   : > { %v1289_v10 = vadd.f32 %v1288_v63, %v1287_v55  ;;  %v1281_v11 = vrot.slane %v1280_v0, 1  ;;  %v1301_v12 = vadd.f32 %v1300_v1, %v1299_v57  ;;  %v1293_v13 = vrot.slane %v1292_v2, 2 }
 0x1ca   : > { %v2427_v14 = vpop.eup %1959  ;;  %v1312_v50 = vrot.slane %v1311_v43, 4  ;;  %v1304_v16 = vsel %vm271_vm0, %v2422_v45, 0.0  ;;  %1967 = vpow2.f32 %v1234_v3  ;;  %v1232_v17 = vmul.f32 1.442695, %v1190_v8 }
 0x1cb   : > { %1969 = vrcp.f32 %v1289_v10  ;;  %v1282_v21 = vadd.f32 %v1281_v11, %v1280_v0  ;;  %v1302_v38 = vrot.slane %v1301_v12, 1  ;;  %v1294_v62 = vadd.f32 %v1293_v13, %v1292_v2 }
 0x1cc   : > { %v2431_v23 = vpop.eup %1961  ;;  %v1313_v24 = vadd.f32 %v1312_v50, %v1311_v43  ;;  %v1305_v59 = vrot.slane %v1304_v16, 4  ;;  %v1325_v25 = vsel %vm271_vm0, %v2427_v14, 0.0  ;;  %1971 = vpow2.f32 %v1232_v17 }
 0x1cd   : > { %1973 = vrcp.f32 %v1282_v21  ;;  %v1303_v29 = vadd.f32 %v1302_v38, %v1301_v12  ;;  %v1295_v30 = vrot.slane %v1294_v62, 1  ;;  %v1326_v32 = vrot.slane %v1325_v25, 4 }
 0x1ce   : > { %v1314_v22 = vrot.slane %v1313_v24, 2  ;;  %v1306_v35 = vadd.f32 %v1305_v59, %v1304_v16  ;;  %v1318_v36 = vsel %vm271_vm0, %v2431_v23, 0.0  ;;  %v1049_v40 = vmax.f32 %v2404_v27, %v1048_v39 }
 0x1cf   : > { %1975 = vrcp.f32 %v1303_v29  ;;  %v1296_v41 = vadd.f32 %v1295_v30, %v1294_v62  ;;  %v1327_v26 = vadd.f32 %v1326_v32, %v1325_v25  ;;  %v1319_v42 = vrot.slane %v1318_v36, 4 }
 0x1d0   : > { %v1315_v46 = vadd.f32 %v1314_v22, %v1313_v24  ;;  %v1307_v31 = vrot.slane %v1306_v35, 2  ;;  %v1050_v47 = vrot.slane %v1049_v40, 2  ;;  %v1040_v48 = vsel %vm271_vm0, %v2396_v19, -inf }
 0x1d1   : > { %1977 = vrcp.f32 %v1296_v41  ;;  %v1328_v51 = vrot.slane %v1327_v26, 2  ;;  %v1320_v52 = vadd.f32 %v1319_v42, %v1318_v36  ;;  %v1041_v54 = vrot.slane %v1040_v48, 4 }
 0x1d2   : > { %v1316_v55 = vrot.slane %v1315_v46, 1  ;;  %v1308_v56 = vadd.f32 %v1307_v31, %v1306_v35  ;;  %v1051_v57 = vmax.f32 %v1049_v40, %v1050_v47  ;;  %v2441_v27 = vadd.f32 %v1914_v28, %v2328_v18 }
 0x1d3   : > { %v2443_v39 = vpop.eup %1963  ;;  %v1329_v58 = vadd.f32 %v1328_v51, %v1327_v26  ;;  %v1321_v37 = vrot.slane %v1320_v52, 2  ;;  %v1042_v60 = vmax.f32 %v1040_v48, %v1041_v54  ;;  %v2446_v61 = vadd.f32 %v2328_v18, %v867_v49  ;;  %v1917_v26 = vpop.f32.mrf.mxu1 }
 0x1d4   : > { %v1317_v63 = vadd.f32 %v1316_v55, %v1315_v46  ;;  %v1309_v0 = vrot.slane %v1308_v56, 1  ;;  %v1339_v1 = vsel %vm271_vm0, %v2443_v39, 0.0  ;;  %v1052_v2 = vrot.slane %v1051_v57, 1 }
 0x1d5   : > { %v2450_v43 = vpop.eup %1965  ;;  %v1330_v3 = vrot.slane %v1329_v58, 1  ;;  %v1322_v8 = vadd.f32 %v1321_v37, %v1320_v52  ;;  %v1340_v10 = vrot.slane %v1339_v1, 4  ;;  %v1043_v11 = vrot.slane %v1042_v60, 2  ;;  %v877_v37 = vpop.f32.mrf.mxu1 }
 0x1d6   : > { %1979 = vrcp.f32 %v1317_v63  ;;  %v1310_v12 = vadd.f32 %v1309_v0, %v1308_v56  ;;  %v1332_v13 = vsel %vm271_vm0, %v2450_v43, 0.0  ;;  %v1053_v50 = vmax.f32 %v1051_v57, %v1052_v2 }
 0x1d7   : > { %v2454_v16 = vpop.eup %1967  ;;  %v1331_v17 = vadd.f32 %v1330_v3, %v1329_v58  ;;  %v1323_v21 = vrot.slane %v1322_v8, 1  ;;  %v1341_v38 = vadd.f32 %v1340_v10, %v1339_v1  ;;  %v1333_v62 = vrot.slane %v1332_v13, 4 }
 0x1d8   : > { %v1970_v24 = vpop.eup %1969  ;;  %1981 = vrcp.f32 %v1310_v12  ;;  %v1353_v59 = vsel %vm271_vm0, %v2454_v16, 0.0  ;;  %v1193_v25 = vsub.f32 %v2391_v15, %v1053_v50  ;;  %v1044_v28 = vmax.f32 %v1042_v60, %v1043_v11  ;;  %v1920_v50 = vpop.f32.mrf.mxu1 }
 0x1d9   : > { %v2459_v29 = vpop.eup %1971  ;;  %v1533_v30 = vmul.f32 %v1970_v24, %v2393_v53  ;;  %1983 = vrcp.f32 %v1331_v17  ;;  %v1324_v32 = vadd.f32 %v1323_v21, %v1322_v8  ;;  %v1342_v22 = vrot.slane %v1341_v38, 2 }
 0x1da   : > { %v1974_v35 = vpop.eup %1973  ;;  %v1334_v36 = vadd.f32 %v1333_v62, %v1332_v13  ;;  %v1354_v40 = vrot.slane %v1353_v59, 4  ;;  %v1346_v15 = vsel %vm271_vm0, %v2459_v29, 0.0  ;;  %v1238_v41 = vmul.f32 1.442695, %v1193_v25 }
 0x1db   : > { %v1565_v53 = vmul.f32 %v1533_v30, %v2175_v5  ;;  %v1532_v42 = vmul.f32 %v1974_v35, %v2400_v20  ;;  %1985 = vrcp.f32 %v1324_v32  ;;  %v1343_v46 = vadd.f32 %v1342_v22, %v1341_v38 }
 0x1dc   : > { %v1976_v31 = vpop.eup %1975  ;;  %v1335_v47 = vrot.slane %v1334_v36, 2  ;;  %v1355_v48 = vadd.f32 %v1354_v40, %v1353_v59  ;;  %v1347_v49 = vrot.slane %v1346_v15, 4  ;;  %1987 = vpow2.f32 %v1238_v41  ;;  %v887_v40 = vpop.f32.mrf.mxu1 }
 0x1dd   : > { %1597 = vst.msk [vmem:[%s2467_s19 + $0x8] sm:$0xff] %vm271_vm0, %v1565_v53  ;;  %v1564_v51 = vmul.f32 %v1532_v42, %v2172_v4  ;;  %v1535_v52 = vmul.f32 %v1976_v31, %v2408_v33  ;;  %v1344_v54 = vrot.slane %v1343_v46, 1  ;;  %v1045_v55 = vrot.slane %v1044_v28, 1 }
 0x1de   : > { %v1978_v5 = vpop.eup %1977  ;;  %v1336_v56 = vadd.f32 %v1335_v47, %v1334_v36  ;;  %v1356_v20 = vrot.slane %v1355_v48, 2  ;;  %v1348_v57 = vadd.f32 %v1347_v49, %v1346_v15  ;;  %v1061_v58 = vsel %vm271_vm0, %v2441_v27, -inf }
 0x1df   : > { %1596 = vst.msk [vmem:[%s2467_s19] sm:$0xff] %vm271_vm0, %v1564_v51  ;;  %v1567_v60 = vmul.f32 %v1535_v52, %v2187_v7  ;;  %v1534_v63 = vmul.f32 %v1978_v5, %v2414_v44  ;;  %v1345_v4 = vadd.f32 %v1344_v54, %v1343_v46  ;;  %v1046_v0 = vmax.f32 %v1044_v28, %v1045_v55  ;;  %v2075_v46 = vld [vmem:[%s2169_s7 + $0x20] sm:$0xff] }
 0x1e0   : > { %v1337_v33 = vrot.slane %v1336_v56, 1  ;;  %v1357_v1 = vadd.f32 %v1356_v20, %v1355_v48  ;;  %v1349_v2 = vrot.slane %v1348_v57, 2  ;;  %v1062_v3 = vrot.slane %v1061_v58, 4  ;;  %v1923_v20 = vpop.f32.mrf.mxu1 }
 0x1e1   : > { %1599 = vst.msk [vmem:[%s2467_s19 + $0x18] sm:$0xff] %vm271_vm0, %v1567_v60  ;;  %v1566_v8 = vmul.f32 %v1534_v63, %v2178_v6  ;;  %1989 = vrcp.f32 %v1345_v4  ;;  %v1192_v10 = vsub.f32 %v2396_v19, %v1046_v0  ;;  %v1054_v11 = vsel %vm271_vm0, %v2446_v61, -inf }
 0x1e2   : > { %v1338_v7 = vadd.f32 %v1337_v33, %v1336_v56  ;;  %v1358_v12 = vrot.slane %v1357_v1, 1  ;;  %v1350_v44 = vadd.f32 %v1349_v2, %v1348_v57  ;;  %v1063_v13 = vmax.f32 %v1061_v58, %v1062_v3  ;;  %v2077_v57 = vld [vmem:[%s2169_s7 + $0x30] sm:$0xff] }
 0x1e3   : > { %v1980_v17 = vpop.eup %1979  ;;  %1598 = vst.msk [vmem:[%s2467_s19 + $0x10] sm:$0xff] %vm271_vm0, %v1566_v8  ;;  %v1236_v21 = vmul.f32 1.442695, %v1192_v10  ;;  %v1055_v38 = vrot.slane %v1054_v11, 4  ;;  %v2492_v62 = vadd.f32 %v1917_v26, %v2328_v18  ;;  %v2495_v6 = vadd.f32 %v2328_v18, %v877_v37 }
 0x1e4   : > { %v1537_v19 = vmul.f32 %v1980_v17, %v2419_v34  ;;  %1991 = vrcp.f32 %v1338_v7  ;;  %v1359_v24 = vadd.f32 %v1358_v12, %v1357_v1  ;;  %v1351_v59 = vrot.slane %v1350_v44, 1 }
 0x1e5   : > { %v1982_v25 = vpop.eup %1981  ;;  %1993 = vpow2.f32 %v1236_v21  ;;  %v1064_v28 = vrot.slane %v1063_v13, 2  ;;  %v1056_v30 = vmax.f32 %v1054_v11, %v1055_v38  ;;  %v1075_v32 = vsel %vm271_vm0, %v2492_v62, -inf  ;;  %v897_v38 = vpop.f32.mrf.mxu1 }
 0x1e6   : > { %v1984_v22 = vpop.eup %1983  ;;  %v1569_v35 = vmul.f32 %v1537_v19, %v2194_v9  ;;  %v1536_v36 = vmul.f32 %v1982_v25, %v2422_v45  ;;  %1995 = vrcp.f32 %v1359_v24  ;;  %v1352_v34 = vadd.f32 %v1351_v59, %v1350_v44 }
 0x1e7   : > { %v1539_v15 = vmul.f32 %v1984_v22, %v2427_v14  ;;  %v1065_v41 = vmax.f32 %v1063_v13, %v1064_v28  ;;  %v1057_v26 = vrot.slane %v1056_v30, 2  ;;  %v1076_v53 = vrot.slane %v1075_v32, 4  ;;  %v2076_v14 = vld [vmem:[%s2169_s7 + $0x38] sm:$0xff]  ;;  %v2078_v28 = vld [vmem:[%s2169_s7 + $0x48] sm:$0xff] }
 0x1e8   : > { %v1986_v42 = vpop.eup %1985  ;;  %1601 = vst.msk [vmem:[%s2467_s19 + $0x28] sm:$0xff] %vm271_vm0, %v1569_v35  ;;  %v1568_v31 = vmul.f32 %v2075_v46, %v1536_v36  ;;  %1997 = vrcp.f32 %v1352_v34  ;;  %v1068_v9 = vsel %vm271_vm0, %v2495_v6, -inf  ;;  %v2509_v45 = vadd.f32 %v1920_v50, %v2328_v18 }
 0x1e9   : > { %v2511_v47 = vpop.eup %1987  ;;  %v1571_v48 = vmul.f32 %v2076_v14, %v1539_v15  ;;  %v1538_v49 = vmul.f32 %v1986_v42, %v2431_v23  ;;  %v1066_v51 = vrot.slane %v1065_v41, 1  ;;  %v1058_v52 = vmax.f32 %v1056_v30, %v1057_v26  ;;  %v2079_v42 = vld [vmem:[%s2169_s7 + $0x40] sm:$0xff] }
 0x1ea   : > { %1600 = vst.msk [vmem:[%s2467_s19 + $0x20] sm:$0xff] %vm271_vm0, %v1568_v31  ;;  %v1367_v54 = vsel %vm271_vm0, %v2511_v47, 0.0  ;;  %v1077_v55 = vmax.f32 %v1075_v32, %v1076_v53  ;;  %v1069_v5 = vrot.slane %v1068_v9, 4  ;;  %v1089_v56 = vsel %vm271_vm0, %v2509_v45, -inf  ;;  %v1926_v53 = vpop.f32.mrf.mxu1 }
 0x1eb   : > { %1603 = vst.msk [vmem:[%s2467_s19 + $0x38] sm:$0xff] %vm271_vm0, %v1571_v48  ;;  %v1570_v58 = vmul.f32 %v2077_v57, %v1538_v49  ;;  %v1368_v37 = vrot.slane %v1367_v54, 4  ;;  %v1067_v23 = vmax.f32 %v1065_v41, %v1066_v51  ;;  %v1059_v60 = vrot.slane %v1058_v52, 1 }
 0x1ec   : > { %v1078_v63 = vrot.slane %v1077_v55, 2  ;;  %v1070_v4 = vmax.f32 %v1068_v9, %v1069_v5  ;;  %v1090_v0 = vrot.slane %v1089_v56, 4  ;;  %v2525_v33 = vadd.f32 %v2328_v18, %v887_v40 }
 0x1ed   : > { %1602 = vst.msk [vmem:[%s2467_s19 + $0x30] sm:$0xff] %vm271_vm0, %v1570_v58  ;;  %v1369_v1 = vadd.f32 %v1368_v37, %v1367_v54  ;;  %v1195_v2 = vsub.f32 %v2441_v27, %v1067_v23  ;;  %v1060_v3 = vmax.f32 %v1058_v52, %v1059_v60  ;;  %v2531_v8 = vadd.f32 %v1923_v20, %v2328_v18  ;;  %v2080_v54 = vld [vmem:[%s2169_s7 + $0x58] sm:$0xff]  ;;  %v907_v58 = vpop.f32.mrf.mxu1  ;;  %v2081_v37 = vld [vmem:[%s2169_s7 + $0x50] sm:$0xff] }
 0x1ee   : > { %v1990_v10 = vpop.eup %1989  ;;  %v1079_v11 = vmax.f32 %v1077_v55, %v1078_v63  ;;  %v1071_v7 = vrot.slane %v1070_v4, 2  ;;  %v1091_v12 = vmax.f32 %v1089_v56, %v1090_v0  ;;  %v1082_v44 = vsel %vm271_vm0, %v2525_v33, -inf }
 0x1ef   : > { %v1541_v13 = vmul.f32 %v1990_v10, %v2443_v39  ;;  %v1370_v50 = vrot.slane %v1369_v1, 2  ;;  %v1242_v17 = vmul.f32 1.442695, %v1195_v2  ;;  %v1194_v21 = vsub.f32 %v2446_v61, %v1060_v3 }
 0x1f0   : > { %v1080_v27 = vrot.slane %v1079_v11, 1  ;;  %v1072_v19 = vmax.f32 %v1070_v4, %v1071_v7  ;;  %v1092_v24 = vrot.slane %v1091_v12, 2  ;;  %v1083_v59 = vrot.slane %v1082_v44, 4 }
 0x1f1   : > { %v1992_v25 = vpop.eup %1991  ;;  %v1573_v30 = vmul.f32 %v2078_v28, %v1541_v13  ;;  %v1371_v32 = vadd.f32 %v1370_v50, %v1369_v1  ;;  %1999 = vpow2.f32 %v1242_v17  ;;  %v1240_v22 = vmul.f32 1.442695, %v1194_v21 }
 0x1f2   : > { %v2538_v35 = vpop.eup %1993  ;;  %v1540_v39 = vmul.f32 %v1992_v25, %v2450_v43  ;;  %v1081_v36 = vmax.f32 %v1079_v11, %v1080_v27  ;;  %v1073_v34 = vrot.slane %v1072_v19, 1  ;;  %v1093_v61 = vmax.f32 %v1091_v12, %v1092_v24 }
 0x1f3   : > { %v1996_v40 = vpop.eup %1995  ;;  %1605 = vst.msk [vmem:[%s2467_s19 + $0x48] sm:$0xff] %vm271_vm0, %v1573_v30  ;;  %v1372_v15 = vrot.slane %v1371_v32, 1  ;;  %v1360_v41 = vsel %vm271_vm0, %v2538_v35, 0.0  ;;  %2001 = vpow2.f32 %v1240_v22  ;;  %v1084_v26 = vmax.f32 %v1082_v44, %v1083_v59  ;;  %v1929_v44 = vpop.f32.mrf.mxu1 }
 0x1f4   : > { %v1572_v46 = vmul.f32 %v2079_v42, %v1540_v39  ;;  %v1543_v31 = vmul.f32 %v1996_v40, %v2454_v16  ;;  %v1361_v43 = vrot.slane %v1360_v41, 4  ;;  %v1197_v9 = vsub.f32 %v2492_v62, %v1081_v36 }
 0x1f5   : > { %v1998_v14 = vpop.eup %1997  ;;  %v1373_v48 = vadd.f32 %v1372_v15, %v1371_v32  ;;  %v1074_v49 = vmax.f32 %v1072_v19, %v1073_v34  ;;  %v1094_v51 = vrot.slane %v1093_v61, 1  ;;  %v1085_v52 = vrot.slane %v1084_v26, 2  ;;  %v917_v40 = vpop.f32.mrf.mxu1 }
 0x1f6   : > { %1604 = vst.msk [vmem:[%s2467_s19 + $0x40] sm:$0xff] %vm271_vm0, %v1572_v46  ;;  %v1575_v55 = vmul.f32 %v2080_v54, %v1543_v31  ;;  %v1542_v5 = vmul.f32 %v1998_v14, %v2459_v29  ;;  %v1362_v56 = vadd.f32 %v1361_v43, %v1360_v41  ;;  %v1246_v20 = vmul.f32 1.442695, %v1197_v9 }
 0x1f7   : > { %2003 = vrcp.f32 %v1373_v48  ;;  %v1196_v16 = vsub.f32 %v2495_v6, %v1074_v49  ;;  %v1095_v62 = vmax.f32 %v1093_v61, %v1094_v51  ;;  %v1086_v57 = vmax.f32 %v1084_v26, %v1085_v52 }
 0x1f8   : > { %1607 = vst.msk [vmem:[%s2467_s19 + $0x58] sm:$0xff] %vm271_vm0, %v1575_v55  ;;  %v1574_v23 = vmul.f32 %v2081_v37, %v1542_v5  ;;  %v1363_v60 = vrot.slane %v1362_v56, 2  ;;  %2005 = vpow2.f32 %v1246_v20  ;;  %v1103_v63 = vsel %vm271_vm0, %v2531_v8, -inf }
 0x1f9   : > { %v1244_v4 = vmul.f32 1.442695, %v1196_v16  ;;  %v1199_v29 = vsub.f32 %v2509_v45, %v1095_v62  ;;  %v1087_v0 = vrot.slane %v1086_v57, 1  ;;  %v1104_v1 = vrot.slane %v1103_v63, 4 }
 0x1fa   : > { %1606 = vst.msk [vmem:[%s2467_s19 + $0x50] sm:$0xff] %vm271_vm0, %v1574_v23  ;;  %v1364_v6 = vadd.f32 %v1363_v60, %v1362_v56  ;;  %v2562_v2 = vadd.f32 %v2328_v18, %v897_v38  ;;  %v2565_v3 = vadd.f32 %v1926_v53, %v2328_v18  ;;  %v2568_v10 = vadd.f32 %v2328_v18, %v907_v58  ;;  %v2082_v23 = vld [vmem:[%s2169_s7 + $0x68] sm:$0xff] }
 0x1fb   : > { %2007 = vpow2.f32 %v1244_v4  ;;  %v1250_v11 = vmul.f32 1.442695, %v1199_v29  ;;  %v1088_v7 = vmax.f32 %v1086_v57, %v1087_v0  ;;  %v1105_v12 = vmax.f32 %v1103_v63, %v1104_v1 }
 0x1fc   : > { %v1365_v45 = vrot.slane %v1364_v6, 1  ;;  %v1096_v13 = vsel %vm271_vm0, %v2562_v2, -inf  ;;  %v1117_v50 = vsel %vm271_vm0, %v2565_v3, -inf  ;;  %v1110_v17 = vsel %vm271_vm0, %v2568_v10, -inf }
 0x1fd   : > { %2009 = vpow2.f32 %v1250_v11  ;;  %v1198_v21 = vsub.f32 %v2525_v33, %v1088_v7  ;;  %v1106_v38 = vrot.slane %v1105_v12, 2  ;;  %v1097_v27 = vrot.slane %v1096_v13, 4 }
 0x1fe   : > { %v2577_v19 = vpop.eup %1999  ;;  %v1366_v24 = vadd.f32 %v1365_v45, %v1364_v6  ;;  %v1118_v59 = vrot.slane %v1117_v50, 4  ;;  %v1111_v25 = vrot.slane %v1110_v17, 4  ;;  %v2580_v28 = vadd.f32 %v1929_v44, %v2328_v18 }
 0x1ff   : > { %v1381_v30 = vsel %vm271_vm0, %v2577_v19, 0.0  ;;  %v1248_v32 = vmul.f32 1.442695, %v1198_v21  ;;  %v1107_v22 = vmax.f32 %v1105_v12, %v1106_v38  ;;  %v1098_v39 = vmax.f32 %v1096_v13, %v1097_v27  ;;  %v1932_v21 = vpop.f32.mrf.mxu1 }
 0x200   : > { %v2584_v36 = vpop.eup %2001  ;;  %2011 = vrcp.f32 %v1366_v24  ;;  %v1382_v33 = vrot.slane %v1381_v30, 4  ;;  %v1119_v34 = vmax.f32 %v1117_v50, %v1118_v59  ;;  %v1112_v61 = vmax.f32 %v1110_v17, %v1111_v25 }
 0x201   : > { %v1374_v15 = vsel %vm271_vm0, %v2584_v36, 0.0  ;;  %2013 = vpow2.f32 %v1248_v32  ;;  %v1108_v41 = vrot.slane %v1107_v22, 1  ;;  %v1099_v26 = vrot.slane %v1098_v39, 2 }
 0x202   : > { %v1383_v53 = vadd.f32 %v1382_v33, %v1381_v30  ;;  %v1375_v42 = vrot.slane %v1374_v15, 4  ;;  %v1120_v46 = vrot.slane %v1119_v34, 2  ;;  %v1113_v31 = vrot.slane %v1112_v61, 2 }
 0x203   : > { %v1109_v43 = vmax.f32 %v1107_v22, %v1108_v41  ;;  %v1100_v9 = vmax.f32 %v1098_v39, %v1099_v26  ;;  %v2590_v14 = vsel %vm271_vm0, %v2580_v28, -inf  ;;  %v2593_v48 = vadd.f32 %v2328_v18, %v917_v40 }
 0x204   : > { %v2004_v49 = vpop.eup %2003  ;;  %v1384_v51 = vrot.slane %v1383_v53, 2  ;;  %v1376_v52 = vadd.f32 %v1375_v42, %v1374_v15  ;;  %v1121_v54 = vmax.f32 %v1119_v34, %v1120_v46  ;;  %v1114_v55 = vmax.f32 %v1112_v61, %v1113_v31  ;;  %v927_v15 = vpop.f32.mrf.mxu1  ;;  %v2083_v42 = vld [vmem:[%s2169_s7 + $0x60] sm:$0xff] }
 0x205   : > { %v2595_v5 = vpop.eup %2005  ;;  %v1545_v56 = vmul.f32 %v2004_v49, %v2511_v47  ;;  %v1201_v20 = vsub.f32 %v2531_v8, %v1109_v43  ;;  %v1101_v16 = vrot.slane %v1100_v9, 1  ;;  %v1132_v62 = vrot.slane %v2590_v14, 4 }
 0x206   : > { %v1385_v57 = vadd.f32 %v1384_v51, %v1383_v53  ;;  %v1377_v58 = vrot.slane %v1376_v52, 2  ;;  %v1395_v18 = vsel %vm271_vm0, %v2595_v5, 0.0  ;;  %v1122_v37 = vrot.slane %v1121_v54, 1 }
 0x207   : > { %v1577_v60 = vmul.f32 %v2082_v23, %v1545_v56  ;;  %v1396_v63 = vrot.slane %v1395_v18, 4  ;;  %v1254_v4 = vmul.f32 1.442695, %v1201_v20  ;;  %v1102_v29 = vmax.f32 %v1100_v9, %v1101_v16  ;;  %v1935_v56 = vpop.f32.mrf.mxu1  ;;  %v2630_v16 = vld [vmem:[%s2789_s4] ss:$0 sm:$0xff] }
 0x208   : > { %v2603_v0 = vpop.eup %2007  ;;  %v1386_v47 = vrot.slane %v1385_v57, 1  ;;  %v1378_v1 = vadd.f32 %v1377_v58, %v1376_v52  ;;  %v1123_v8 = vmax.f32 %v1121_v54, %v1122_v37  ;;  %v1115_v6 = vrot.slane %v1114_v55, 1 }
 0x209   : > { %1609 = vst.msk [vmem:[%s2467_s19 + $0x68] sm:$0xff] %vm271_vm0, %v1577_v60  ;;  %v1397_v11 = vadd.f32 %v1396_v63, %v1395_v18  ;;  %v1388_v7 = vsel %vm271_vm0, %v2603_v0, 0.0  ;;  %2015 = vpow2.f32 %v1254_v4  ;;  %v1200_v12 = vsub.f32 %v2562_v2, %v1102_v29 }
 0x20a   : > { %v2610_v44 = vpop.eup %2009  ;;  %v1387_v45 = vadd.f32 %v1386_v47, %v1385_v57  ;;  %v1379_v13 = vrot.slane %v1378_v1, 1  ;;  %v1389_v50 = vrot.slane %v1388_v7, 4  ;;  %v1203_v17 = vsub.f32 %v2565_v3, %v1123_v8 }
 0x20b   : > { %v1398_v38 = vrot.slane %v1397_v11, 2  ;;  %v1409_v27 = vsel %vm271_vm0, %v2610_v44, 0.0  ;;  %v1252_v24 = vmul.f32 1.442695, %v1200_v12  ;;  %v1116_v59 = vmax.f32 %v1114_v55, %v1115_v6 }
 0x20c   : > { %2017 = vrcp.f32 %v1387_v45  ;;  %v1380_v25 = vadd.f32 %v1379_v13, %v1378_v1  ;;  %v1390_v30 = vadd.f32 %v1389_v50, %v1388_v7  ;;  %v1410_v32 = vrot.slane %v1409_v27, 4 }
 0x20d   : > { %v2012_v2 = vpop.eup %2011  ;;  %v1399_v22 = vadd.f32 %v1398_v38, %v1397_v11  ;;  %2019 = vpow2.f32 %v1252_v24  ;;  %v1258_v39 = vmul.f32 1.442695, %v1203_v17  ;;  %v1202_v33 = vsub.f32 %v2568_v10, %v1116_v59 }
 0x20e   : > { %v2616_v34 = vpop.eup %2013  ;;  %v1544_v3 = vmul.f32 %v2012_v2, %v2538_v35  ;;  %2021 = vrcp.f32 %v1380_v25  ;;  %v1391_v61 = vrot.slane %v1390_v30, 2  ;;  %v1411_v40 = vadd.f32 %v1410_v32, %v1409_v27 }
 0x20f   : > { %v1400_v41 = vrot.slane %v1399_v22, 1  ;;  %v1402_v26 = vsel %vm271_vm0, %v2616_v34, 0.0  ;;  %2023 = vpow2.f32 %v1258_v39  ;;  %v1256_v53 = vmul.f32 1.442695, %v1202_v33 }
 0x210   : > { %v1576_v46 = vmul.f32 %v2083_v42, %v1544_v3  ;;  %v1392_v31 = vadd.f32 %v1391_v61, %v1390_v30  ;;  %v1412_v43 = vrot.slane %v1411_v40, 2  ;;  %v1403_v10 = vrot.slane %v1402_v26, 4 }
 0x211   : > { %v1401_v9 = vadd.f32 %v1400_v41, %v1399_v22  ;;  %2025 = vpow2.f32 %v1256_v53  ;;  %v1133_v35 = vmax.f32 %v2590_v14, %v1132_v62  ;;  %v1124_v49 = vsel %vm271_vm0, %v2593_v48, -inf }
 0x212   : > { %1608 = vst.msk [vmem:[%s2467_s19 + $0x60] sm:$0xff] %vm271_vm0, %v1576_v46  ;;  %v1393_v51 = vrot.slane %v1392_v31, 1  ;;  %v1413_v52 = vadd.f32 %v1412_v43, %v1411_v40  ;;  %v1404_v54 = vadd.f32 %v1403_v10, %v1402_v26  ;;  %v1125_v55 = vrot.slane %v1124_v49, 4 }
 0x213   : > { %2027 = vrcp.f32 %v1401_v9  ;;  %v1134_v20 = vrot.slane %v1133_v35, 2  ;;  %v2633_v57 = vadd.f32 %v2630_v16, %v1932_v21  ;;  %v2636_v14 = vadd.f32 %v2630_v16, %v927_v15  ;;  %v2085_v15 = vld [vmem:[%s2169_s7 + $0x78] sm:$0xff] }
 0x214   : > { %v1394_v62 = vadd.f32 %v1393_v51, %v1392_v31  ;;  %v1414_v58 = vrot.slane %v1413_v52, 1  ;;  %v1405_v18 = vrot.slane %v1404_v54, 2  ;;  %v1126_v37 = vmax.f32 %v1124_v49, %v1125_v55 }
 0x215   : > { %v1135_v23 = vmax.f32 %v1133_v35, %v1134_v20  ;;  %v1145_v60 = vsel %vm271_vm0, %v2633_v57, -inf  ;;  %v1138_v63 = vsel %vm271_vm0, %v2636_v14, -inf  ;;  %v2643_v4 = vadd.f32 %v2630_v16, %v1935_v56 }
 0x216   : > { %v2645_v29 = vpop.eup %2015  ;;  %2029 = vrcp.f32 %v1394_v62  ;;  %v1415_v47 = vadd.f32 %v1414_v58, %v1413_v52  ;;  %v1406_v1 = vadd.f32 %v1405_v18, %v1404_v54  ;;  %v1127_v8 = vrot.slane %v1126_v37, 2 }
 0x217   : > { %v1423_v6 = vsel %vm271_vm0, %v2645_v29, 0.0  ;;  %v1136_v11 = vrot.slane %v1135_v23, 1  ;;  %v1146_v7 = vrot.slane %v1145_v60, 4  ;;  %v1139_v12 = vrot.slane %v1138_v63, 4 }
 0x218   : > { %2031 = vrcp.f32 %v1415_v47  ;;  %v1407_v45 = vrot.slane %v1406_v1, 1  ;;  %v1424_v13 = vrot.slane %v1423_v6, 4  ;;  %v1128_v50 = vmax.f32 %v1126_v37, %v1127_v8 }
 0x219   : > { %v2018_v17 = vpop.eup %2017  ;;  %v1137_v21 = vmax.f32 %v1135_v23, %v1136_v11  ;;  %v1147_v38 = vmax.f32 %v1145_v60, %v1146_v7  ;;  %v1140_v27 = vmax.f32 %v1138_v63, %v1139_v12  ;;  %v2651_v24 = vsel %vm271_vm0, %v2643_v4, -inf  ;;  %v937_v60 = vpop.f32.mrf.mxu1 }
 0x21a   : > { %v2653_v59 = vpop.eup %2019  ;;  %v1547_v25 = vmul.f32 %v2018_v17, %v2577_v19  ;;  %v1408_v30 = vadd.f32 %v1407_v45, %v1406_v1  ;;  %v1425_v32 = vadd.f32 %v1424_v13, %v1423_v6  ;;  %v1129_v2 = vrot.slane %v1128_v50, 1  ;;  %v2087_v6 = vld [vmem:[%s2169_s7 + $0x88] sm:$0xff] }
 0x21b   : > { %v2022_v22 = vpop.eup %2021  ;;  %v1416_v39 = vsel %vm271_vm0, %v2653_v59, 0.0  ;;  %v1205_v33 = vsub.f32 %v2580_v28, %v1137_v21  ;;  %v1148_v3 = vrot.slane %v1147_v38, 2  ;;  %v1141_v61 = vrot.slane %v1140_v27, 2  ;;  %v2086_v28 = vld [vmem:[%s2169_s7 + $0x70] sm:$0xff] }
 0x21c   : > { %v2659_v40 = vpop.eup %2023  ;;  %v1579_v41 = vmul.f32 %v2085_v15, %v1547_v25  ;;  %v1546_v26 = vmul.f32 %v2022_v22, %v2584_v36  ;;  %2033 = vrcp.f32 %v1408_v30  ;;  %v1426_v19 = vrot.slane %v1425_v32, 2  ;;  %v1938_v25 = vpop.f32.mrf.mxu1  ;;  %v2088_v30 = vld [vmem:[%s2169_s7 + $0x80] sm:$0xff] }
 0x21d   : > { %v1417_v53 = vrot.slane %v1416_v39, 4  ;;  %v1437_v42 = vsel %vm271_vm0, %v2659_v40, 0.0  ;;  %v1262_v46 = vmul.f32 1.442695, %v1205_v33  ;;  %v1130_v31 = vmax.f32 %v1128_v50, %v1129_v2 }
 0x21e   : > { %v2665_v43 = vpop.eup %2025  ;;  %1611 = vst.msk [vmem:[%s2467_s19 + $0x78] sm:$0xff] %vm271_vm0, %v1579_v41  ;;  %v1578_v10 = vmul.f32 %v2086_v28, %v1546_v26  ;;  %v1427_v9 = vadd.f32 %v1426_v19, %v1425_v32  ;;  %v1438_v35 = vrot.slane %v1437_v42, 4  ;;  %v1149_v49 = vmax.f32 %v1147_v38, %v1148_v3 }
 0x21f   : > { %v1418_v51 = vadd.f32 %v1417_v53, %v1416_v39  ;;  %v1430_v36 = vsel %vm271_vm0, %v2665_v43, 0.0  ;;  %2035 = vpow2.f32 %v1262_v46  ;;  %v1204_v52 = vsub.f32 %v2593_v48, %v1130_v31 }
 0x220   : > { %v2028_v54 = vpop.eup %2027  ;;  %1610 = vst.msk [vmem:[%s2467_s19 + $0x70] sm:$0xff] %vm271_vm0, %v1578_v10  ;;  %v1428_v55 = vrot.slane %v1427_v9, 1  ;;  %v1439_v56 = vadd.f32 %v1438_v35, %v1437_v42  ;;  %v1431_v20 = vrot.slane %v1430_v36, 4  ;;  %v1150_v62 = vrot.slane %v1149_v49, 1 }
 0x221   : > { %v1549_v58 = vmul.f32 %v2028_v54, %v2595_v5  ;;  %v1419_v18 = vrot.slane %v1418_v51, 2  ;;  %v1260_v37 = vmul.f32 1.442695, %v1204_v52  ;;  %v1142_v23 = vmax.f32 %v1140_v27, %v1141_v61 }
 0x222   : > { %v1429_v63 = vadd.f32 %v1428_v55, %v1427_v9  ;;  %v1440_v47 = vrot.slane %v1439_v56, 2  ;;  %v1432_v1 = vadd.f32 %v1431_v20, %v1430_v36  ;;  %v1151_v8 = vmax.f32 %v1149_v49, %v1150_v62 }
 0x223   : > { %v2030_v48 = vpop.eup %2029  ;;  %v1581_v11 = vmul.f32 %v2087_v6, %v1549_v58  ;;  %v1420_v7 = vadd.f32 %v1419_v18, %v1418_v51  ;;  %2037 = vpow2.f32 %v1260_v37  ;;  %v1143_v12 = vrot.slane %v1142_v23, 1  ;;  %v2090_v51 = vld [vmem:[%s2169_s7 + $0x90] sm:$0xff] }
 0x224   : > { %v1548_v45 = vmul.f32 %v2030_v48, %v2603_v0  ;;  %2039 = vrcp.f32 %v1429_v63  ;;  %v1441_v5 = vadd.f32 %v1440_v47, %v1439_v56  ;;  %v1433_v13 = vrot.slane %v1432_v1, 2 }
 0x225   : > { %v2032_v50 = vpop.eup %2031  ;;  %1613 = vst.msk [vmem:[%s2467_s19 + $0x88] sm:$0xff] %vm271_vm0, %v1581_v11  ;;  %v1421_v17 = vrot.slane %v1420_v7, 1  ;;  %v1207_v21 = vsub.f32 %v2633_v57, %v1151_v8  ;;  %v1144_v38 = vmax.f32 %v1142_v23, %v1143_v12  ;;  %v1160_v27 = vrot.slane %v2651_v24, 4  ;;  %v2089_v57 = vld [vmem:[%s2169_s7 + $0x98] sm:$0xff] }
 0x226   : > { %v1580_v32 = vmul.f32 %v2088_v30, %v1548_v45  ;;  %v1551_v2 = vmul.f32 %v2032_v50, %v2610_v44  ;;  %v1442_v0 = vrot.slane %v1441_v5, 1  ;;  %v1434_v22 = vadd.f32 %v1433_v13, %v1432_v1 }
 0x227   : > { %v1422_v39 = vadd.f32 %v1421_v17, %v1420_v7  ;;  %v1266_v33 = vmul.f32 1.442695, %v1207_v21  ;;  %v1206_v3 = vsub.f32 %v2636_v14, %v1144_v38  ;;  %v1161_v61 = vmax.f32 %v2651_v24, %v1160_v27  ;;  %v947_v14 = vpop.f32.mrf.mxu1  ;;  %v2091_v17 = vld [vmem:[%s2169_s7 + $0xa8] sm:$0xff] }
 0x228   : > { %1612 = vst.msk [vmem:[%s2467_s19 + $0x80] sm:$0xff] %vm271_vm0, %v1580_v32  ;;  %v1583_v15 = vmul.f32 %v2089_v57, %v1551_v2  ;;  %v1443_v41 = vadd.f32 %v1442_v0, %v1441_v5  ;;  %v1435_v26 = vrot.slane %v1434_v22, 1  ;;  %v2690_v19 = vadd.f32 %v2630_v16, %v937_v60 }
 0x229   : > { %v2034_v53 = vpop.eup %2033  ;;  %2041 = vrcp.f32 %v1422_v39  ;;  %v1264_v44 = vmul.f32 1.442695, %v1206_v3  ;;  %v1162_v42 = vrot.slane %v1161_v61, 2  ;;  %v2693_v46 = vadd.f32 %v2630_v16, %v1938_v25 }
 0x22a   : > { %1615 = vst.msk [vmem:[%s2467_s19 + $0x98] sm:$0xff] %vm271_vm0, %v1583_v15  ;;  %v1550_v24 = vmul.f32 %v2034_v53, %v2616_v34  ;;  %2043 = vrcp.f32 %v1443_v41  ;;  %v1436_v31 = vadd.f32 %v1435_v26, %v1434_v22  ;;  %v1152_v28 = vsel %vm271_vm0, %v2690_v19, -inf }
 0x22b   : > { %2045 = vpow2.f32 %v1266_v33  ;;  %v1163_v10 = vmax.f32 %v1161_v61, %v1162_v42  ;;  %v1153_v9 = vrot.slane %v1152_v28, 4  ;;  %v1173_v35 = vsel %vm271_vm0, %v2693_v46, -inf }
 0x22c   : > { %v2702_v49 = vpop.eup %2035  ;;  %v1582_v36 = vmul.f32 %v2090_v51, %v1550_v24  ;;  %2047 = vrcp.f32 %v1436_v31  ;;  %v1174_v52 = vrot.slane %v1173_v35, 4  ;;  %v2706_v34 = vadd.f32 %v2630_v16, %v947_v14  ;;  %v2093_v31 = vld [vmem:[%s2169_s7 + $0xb8] sm:$0xff]  ;;  %v2094_v51 = vld [vmem:[%s2169_s7 + $0xb0] sm:$0xff] }
 0x22d   : > { %v1451_v54 = vsel %vm271_vm0, %v2702_v49, 0.0  ;;  %2049 = vpow2.f32 %v1264_v44  ;;  %v1164_v55 = vrot.slane %v1163_v10, 1  ;;  %v1154_v56 = vmax.f32 %v1152_v28, %v1153_v9  ;;  %v2092_v44 = vld [vmem:[%s2169_s7 + $0xa0] sm:$0xff] }
 0x22e   : > { %1614 = vst.msk [vmem:[%s2467_s19 + $0x90] sm:$0xff] %vm271_vm0, %v1582_v36  ;;  %v1452_v20 = vrot.slane %v1451_v54, 4  ;;  %v1175_v62 = vmax.f32 %v1173_v35, %v1174_v52  ;;  %v1166_v58 = vsel %vm271_vm0, %v2706_v34, -inf }
 0x22f   : > { %v1165_v18 = vmax.f32 %v1163_v10, %v1164_v55  ;;  %v1155_v37 = vrot.slane %v1154_v56, 2  ;;  %v1167_v23 = vrot.slane %v1166_v58, 4 }
 0x230   : > { %v2714_v60 = vpop.eup %2037  ;;  %v1453_v16 = vadd.f32 %v1452_v20, %v1451_v54  ;;  %v1176_v63 = vrot.slane %v1175_v62, 2 }
 0x231   : > { %v2040_v47 = vpop.eup %2039  ;;  %v1444_v1 = vsel %vm271_vm0, %v2714_v60, 0.0  ;;  %v1209_v8 = vsub.f32 %v2643_v4, %v1165_v18  ;;  %v1156_v48 = vmax.f32 %v1154_v56, %v1155_v37  ;;  %v1168_v6 = vmax.f32 %v1166_v58, %v1167_v23 }
 0x232   : > { %v1553_v11 = vmul.f32 %v2040_v47, %v2645_v29  ;;  %v1454_v7 = vrot.slane %v1453_v16, 2  ;;  %v1445_v12 = vrot.slane %v1444_v1, 4  ;;  %v1177_v45 = vmax.f32 %v1175_v62, %v1176_v63 }
 0x233   : > { %v1270_v5 = vmul.f32 1.442695, %v1209_v8  ;;  %v1157_v13 = vrot.slane %v1156_v48, 1  ;;  %v1169_v50 = vrot.slane %v1168_v6, 2 }
 0x234   : > { %v1585_v21 = vmul.f32 %v2091_v17, %v1553_v11  ;;  %v1455_v38 = vadd.f32 %v1454_v7, %v1453_v16  ;;  %v1446_v27 = vadd.f32 %v1445_v12, %v1444_v1  ;;  %v1178_v25 = vrot.slane %v1177_v45, 1 }
 0x235   : > { %2051 = vpow2.f32 %v1270_v5  ;;  %v1158_v30 = vmax.f32 %v1156_v48, %v1157_v13  ;;  %v1170_v32 = vmax.f32 %v1168_v6, %v1169_v50  ;;  %v2095_v13 = vld [vmem:[%s2169_s7 + $0xc8] sm:$0xff] }
 0x236   : > { %v2042_v4 = vpop.eup %2041  ;;  %1617 = vst.msk [vmem:[%s2467_s19 + $0xa8] sm:$0xff] %vm271_vm0, %v1585_v21  ;;  %v1456_v29 = vrot.slane %v1455_v38, 1  ;;  %v1447_v2 = vrot.slane %v1446_v27, 2  ;;  %v1179_v0 = vmax.f32 %v1177_v45, %v1178_v25 }
 0x237   : > { %v2044_v22 = vpop.eup %2043  ;;  %v1552_v39 = vmul.f32 %v2042_v4, %v2653_v59  ;;  %v1208_v33 = vsub.f32 %v2690_v19, %v1158_v30  ;;  %v1171_v3 = vrot.slane %v1170_v32, 1 }
 0x238   : > { %v2725_v61 = vpop.eup %2045  ;;  %v1555_v57 = vmul.f32 %v2044_v22, %v2659_v40  ;;  %v1457_v15 = vadd.f32 %v1456_v29, %v1455_v38  ;;  %v1448_v41 = vadd.f32 %v1447_v2, %v1446_v27  ;;  %v1211_v26 = vsub.f32 %v2693_v46, %v1179_v0  ;;  %v2096_v29 = vld [vmem:[%s2169_s7 + $0xc0] sm:$0xff] }
 0x239   : > { %v2048_v53 = vpop.eup %2047  ;;  %v1584_v42 = vmul.f32 %v2092_v44, %v1552_v39  ;;  %v1465_v59 = vsel %vm271_vm0, %v2725_v61, 0.0  ;;  %v1268_v14 = vmul.f32 1.442695, %v1208_v33  ;;  %v1172_v19 = vmax.f32 %v1170_v32, %v1171_v3 }
 0x23a   : > { %v2732_v24 = vpop.eup %2049  ;;  %v1587_v28 = vmul.f32 %v2093_v31, %v1555_v57  ;;  %v1554_v40 = vmul.f32 %v2048_v53, %v2665_v43  ;;  %2053 = vrcp.f32 %v1457_v15  ;;  %v1449_v10 = vrot.slane %v1448_v41, 1 }
 0x23b   : > { %1616 = vst.msk [vmem:[%s2467_s19 + $0xa0] sm:$0xff] %vm271_vm0, %v1584_v42  ;;  %v1466_v46 = vrot.slane %v1465_v59, 4  ;;  %v1458_v9 = vsel %vm271_vm0, %v2732_v24, 0.0  ;;  %2055 = vpow2.f32 %v1268_v14  ;;  %v1274_v35 = vmul.f32 1.442695, %v1211_v26 }
 0x23c   : > { %1619 = vst.msk [vmem:[%s2467_s19 + $0xb8] sm:$0xff] %vm271_vm0, %v1587_v28  ;;  %v1586_v36 = vmul.f32 %v2094_v51, %v1554_v40  ;;  %v1450_v52 = vadd.f32 %v1449_v10, %v1448_v41  ;;  %v1459_v54 = vrot.slane %v1458_v9, 4  ;;  %v1210_v55 = vsub.f32 %v2706_v34, %v1172_v19  ;;  %v2097_v10 = vld [vmem:[%s2169_s7 + $0xd8] sm:$0xff] }
 0x23d   : > { %v1467_v43 = vadd.f32 %v1466_v46, %v1465_v59  ;;  %2057 = vpow2.f32 %v1274_v35 }
 0x23e   : > { %1618 = vst.msk [vmem:[%s2467_s19 + $0xb0] sm:$0xff] %vm271_vm0, %v1586_v36  ;;  %2059 = vrcp.f32 %v1450_v52  ;;  %v1460_v56 = vadd.f32 %v1459_v54, %v1458_v9  ;;  %v1272_v20 = vmul.f32 1.442695, %v1210_v55  ;;  %v2098_v9 = vld [vmem:[%s2169_s7 + $0xd0] sm:$0xff]  ;;  %v2099_v52 = vld [vmem:[%s2169_s7 + $0xe8] sm:$0xff] }
 0x23f   : > { %v1468_v62 = vrot.slane %v1467_v43, 2 }
 0x240   : > { %v1461_v58 = vrot.slane %v1460_v56, 2  ;;  %2061 = vpow2.f32 %v1272_v20  ;;  %v2100_v20 = vld [vmem:[%s2169_s7 + $0xe0] sm:$0xff] }
 0x241   : > { %v1469_v18 = vadd.f32 %v1468_v62, %v1467_v43 }
 0x242   : > { %v2746_v37 = vpop.eup %2051  ;;  %v1462_v23 = vadd.f32 %v1461_v58, %v1460_v56 }
 0x243   : > { %v1470_v16 = vrot.slane %v1469_v18, 1  ;;  %v1479_v63 = vsel %vm271_vm0, %v2746_v37, 0.0 }
 0x244   : > { %v1463_v34 = vrot.slane %v1462_v23, 1  ;;  %v1480_v47 = vrot.slane %v1479_v63, 4 }
 0x245   : > { %v1471_v1 = vadd.f32 %v1470_v16, %v1469_v18  ;;  %v2101_v18 = vld [vmem:[%s2169_s7 + $0xf8] sm:$0xff] }
 0x246   : > { %v1464_v8 = vadd.f32 %v1463_v34, %v1462_v23  ;;  %v1481_v48 = vadd.f32 %v1480_v47, %v1479_v63  ;;  %v2102_v63 = vld [vmem:[%s2169_s7 + $0xf0] sm:$0xff] }
 0x247   : > { %v2054_v6 = vpop.eup %2053  ;;  %2063 = vrcp.f32 %v1471_v1 }
 0x248   : > { %v2056_v11 = vpop.eup %2055  ;;  %v1557_v7 = vmul.f32 %v2054_v6, %v2702_v49  ;;  %2065 = vrcp.f32 %v1464_v8  ;;  %v1482_v12 = vrot.slane %v1481_v48, 2 }
 0x249   : > { %v1472_v45 = vsel %vm271_vm0, %v2056_v11, 0.0 }
 0x24a   : > { %v2058_v5 = vpop.eup %2057  ;;  %v1589_v50 = vmul.f32 %v2095_v13, %v1557_v7  ;;  %v1483_v17 = vadd.f32 %v1482_v12, %v1481_v48  ;;  %v1473_v21 = vrot.slane %v1472_v45, 4 }
 0x24b   : > { %v2060_v38 = vpop.eup %2059  ;;  %v1493_v27 = vsel %vm271_vm0, %v2058_v5, 0.0 }
 0x24c   : > { %1621 = vst.msk [vmem:[%s2467_s19 + $0xc8] sm:$0xff] %vm271_vm0, %v1589_v50  ;;  %v1556_v25 = vmul.f32 %v2060_v38, %v2714_v60  ;;  %v1484_v30 = vrot.slane %v1483_v17, 1  ;;  %v1474_v49 = vadd.f32 %v1473_v21, %v1472_v45  ;;  %v1494_v32 = vrot.slane %v1493_v27, 4 }
 0x24d   : > { %v2062_v4 = vpop.eup %2061 }
 0x24e   : > { %v1588_v2 = vmul.f32 %v2096_v29, %v1556_v25  ;;  %v1485_v0 = vadd.f32 %v1484_v30, %v1483_v17  ;;  %v1475_v22 = vrot.slane %v1474_v49, 2  ;;  %v1495_v39 = vadd.f32 %v1494_v32, %v1493_v27 }
 0x24f   : > { %v1486_v33 = vsel %vm271_vm0, %v2062_v4, 0.0 }
 0x250   : > { %1620 = vst.msk [vmem:[%s2467_s19 + $0xc0] sm:$0xff] %vm271_vm0, %v1588_v2  ;;  %2067 = vrcp.f32 %v1485_v0  ;;  %v1476_v3 = vadd.f32 %v1475_v22, %v1474_v49  ;;  %v1496_v57 = vrot.slane %v1495_v39, 2  ;;  %v1487_v15 = vrot.slane %v1486_v33, 4 }
 0x252   : > { %v1477_v60 = vrot.slane %v1476_v3, 1  ;;  %v1497_v41 = vadd.f32 %v1496_v57, %v1495_v39  ;;  %v1488_v26 = vadd.f32 %v1487_v15, %v1486_v33 }
 0x254   : > { %v2064_v53 = vpop.eup %2063  ;;  %v1478_v44 = vadd.f32 %v1477_v60, %v1476_v3  ;;  %v1498_v42 = vrot.slane %v1497_v41, 1  ;;  %v1489_v59 = vrot.slane %v1488_v26, 2 }
 0x255   : > { %v2066_v14 = vpop.eup %2065  ;;  %v1559_v19 = vmul.f32 %v2064_v53, %v2725_v61 }
 0x256   : > { %v1558_v31 = vmul.f32 %v2066_v14, %v2732_v24  ;;  %2069 = vrcp.f32 %v1478_v44  ;;  %v1499_v28 = vadd.f32 %v1498_v42, %v1497_v41  ;;  %v1490_v40 = vadd.f32 %v1489_v59, %v1488_v26 }
 0x257   : > { %v1591_v46 = vmul.f32 %v2097_v10, %v1559_v19 }
 0x258   : > { %v1590_v35 = vmul.f32 %v2098_v9, %v1558_v31  ;;  %2071 = vrcp.f32 %v1499_v28  ;;  %v1491_v51 = vrot.slane %v1490_v40, 1 }
 0x259   : > { %1623 = vst.msk [vmem:[%s2467_s19 + $0xd8] sm:$0xff] %vm271_vm0, %v1591_v46 }
 0x25a   : > { %1622 = vst.msk [vmem:[%s2467_s19 + $0xd0] sm:$0xff] %vm271_vm0, %v1590_v35  ;;  %v1492_v61 = vadd.f32 %v1491_v51, %v1490_v40 }
 0x25c   : > { %2073 = vrcp.f32 %v1492_v61 }
 0x25d   : > { %v2068_v24 = vpop.eup %2067 }
 0x25e   : > { %v1561_v36 = vmul.f32 %v2068_v24, %v2746_v37 }
 0x260   : > { %v1593_v54 = vmul.f32 %v2099_v52, %v1561_v36 }
 0x262   : > { %1625 = vst.msk [vmem:[%s2467_s19 + $0xe8] sm:$0xff] %vm271_vm0, %v1593_v54 }
 0x263   : > { %v2070_v55 = vpop.eup %2069 }
 0x264   : > { %v1560_v43 = vmul.f32 %v2070_v55, %v2056_v11 }
 0x265   : > { %v2072_v56 = vpop.eup %2071 }
 0x266   : > { %v1592_v62 = vmul.f32 %v2100_v20, %v1560_v43  ;;  %v1563_v58 = vmul.f32 %v2072_v56, %v2058_v5 }
 0x268   : > { %1624 = vst.msk [vmem:[%s2467_s19 + $0xe0] sm:$0xff] %vm271_vm0, %v1592_v62  ;;  %v1595_v23 = vmul.f32 %v2101_v18, %v1563_v58 }
 0x269   : > { %v2074_v16 = vpop.eup %2073 }
 0x26a   : > { %1627 = vst.msk [vmem:[%s2467_s19 + $0xf8] sm:$0xff] %vm271_vm0, %v1595_v23  ;;  %v1562_v37 = vmul.f32 %v2074_v16, %v2062_v4 }
 0x26c   : > { %v1594_v34 = vmul.f32 %v2102_v63, %v1562_v37 }
 0x26e   : > { %1626 = vst.msk [vmem:[%s2467_s19 + $0xf0] sm:$0xff] %vm271_vm0, %v1594_v34 }
 0x26f PF: > { %s15_s18 = sadd.s32 1, %s2109_s18  }
 0x270   : > { %p12_p4 = scmp.ge.s32.totalorder %s15_s18, 4  }
 0x272   :  { %14 = sbr.rel (!%p12_p4) target bundleno = 1 (0x1), region = 70 }

</bundles_post_ra>
